<compile_context>
chip_gen: v6e
topology: v6e:2x2x1
jax: 0.10.0
libtpu: 0.0.40
codegen_flags: <defaults>
</compile_context>

<pallas_src>
import functools

import jax
import jax.numpy as jnp
from jax.experimental import pallas as pl
from jax.experimental.pallas import tpu as pltpu

LANES = 512            # lane-dense feature width (multiple of 128)
MAX_TILE_ROWS = 1024   # rows per block -> <= 2 MiB f32 per input block
NCORES = 2             # leading "parallel" grid axis (megacore on v7x)


def _round_up(x, m):
    return ((x + m - 1) // m) * m


def _geometry(n):
    """Static (padded_rows, tile_rows, tiles_per_core) for n flat elements."""
    rows = _round_up(max(1, -(-n // LANES)), 32)   # 32 sublanes: int8-safe
    tile_r = min(MAX_TILE_ROWS, rows)
    rows = _round_up(rows, tile_r * NCORES)
    return rows, tile_r, rows // (tile_r * NCORES)


# ----------------------------- Pallas kernels ------------------------------

def _focal_sum_kernel(logits_ref, code_ref, out_ref, acc_ref, *, alpha, gamma):
    """Accumulate valid-masked, UNnormalized focal loss; reduce once at end."""
    i = pl.program_id(1)

    @pl.when(i == 0)
    def _init():
        acc_ref[...] = jnp.zeros_like(acc_ref)

    x = logits_ref[...]
    cf = code_ref[...].astype(jnp.float32)         # -1 / 0 / 1
    t = (cf > 0.5).astype(jnp.float32)             # one-hot target
    v = (cf > -0.5).astype(jnp.float32)            # (cls_target != -2) mask

    # stable softplus: log1p(exp(-x)) = max(-x, 0) + log1p(exp(-|x|))
    s = jnp.log1p(jnp.exp(-jnp.abs(x)))            # 2 EUP ops
    ce = jnp.maximum(x, 0.0) - x * t + s           # BCE with logits
    modulator = jnp.exp(-gamma * t * x - gamma * (jnp.maximum(-x, 0.0) + s))
    loss = modulator * ce
    # where(t==1, alpha, 1-alpha) written as a lerp (t is exactly 0/1)
    w_alpha = (1.0 - alpha) + (2.0 * alpha - 1.0) * t
    acc_ref[...] += loss * w_alpha * v

    @pl.when(i == pl.num_programs(1) - 1)
    def _finalize():
        out_ref[...] = jnp.zeros((8, 128), jnp.float32) + jnp.sum(acc_ref[...])


def _huber_sum_kernel(bo_ref, bt_ref, out_ref, acc_ref, *, delta):
    """Accumulate mask-weighted huber loss (size_average=False)."""
    i = pl.program_id(1)

    @pl.when(i == 0)
    def _init():
        acc_ref[...] = jnp.zeros_like(acc_ref)

    bo = bo_ref[...]
    bt = bt_ref[...]
    err = bo - bt
    abs_err = jnp.abs(err)
    quadratic = jnp.minimum(abs_err, delta)
    linear = abs_err - quadratic
    loss = 0.5 * quadratic * quadratic + delta * linear
    mask = (bt != 0.0).astype(jnp.float32)
    acc_ref[...] += loss * mask

    @pl.when(i == pl.num_programs(1) - 1)
    def _finalize():
        out_ref[...] = jnp.zeros((8, 128), jnp.float32) + jnp.sum(acc_ref[...])


# ------------------------------ wrappers ------------------------------------

def _sum_pallas_call(kernel, inputs2d, tile_r, tiles_per_core):
    idx = lambda c, i: (c * tiles_per_core + i, 0)
    out = pl.pallas_call(
        kernel,
        out_shape=jax.ShapeDtypeStruct((NCORES * 8, 128), jnp.float32),
        grid=(NCORES, tiles_per_core),
        in_specs=[pl.BlockSpec((tile_r, LANES), idx) for _ in inputs2d],
        out_specs=pl.BlockSpec((8, 128), lambda c, i: (c, 0)),
        scratch_shapes=[pltpu.VMEM((tile_r, LANES), jnp.float32)],
        compiler_params=pltpu.CompilerParams(
            dimension_semantics=("parallel", "arbitrary"),
            vmem_limit_bytes=32 * 1024 * 1024),
    )(*inputs2d)
    # one per-core partial sum lives in each (8,128) block (broadcast value)
    return jnp.sum(out[::8, 0])


def _focal_sum(logits_flat, code_flat, alpha, gamma):
    n = logits_flat.shape[0]
    rows, tile_r, tiles_per_core = _geometry(n)
    total = rows * LANES
    logits2d = jnp.pad(logits_flat, (0, total - n)).reshape(rows, LANES)
    code2d = jnp.pad(code_flat, (0, total - n),
                     constant_values=-1).astype(jnp.int8).reshape(rows, LANES)
    kernel = functools.partial(_focal_sum_kernel, alpha=alpha, gamma=gamma)
    return _sum_pallas_call(kernel, [logits2d, code2d], tile_r, tiles_per_core)


def _huber_sum(box_out_flat, box_tgt_flat, delta):
    n = box_out_flat.shape[0]
    rows, tile_r, tiles_per_core = _geometry(n)
    total = rows * LANES
    bo2d = jnp.pad(box_out_flat, (0, total - n)).reshape(rows, LANES)
    bt2d = jnp.pad(box_tgt_flat, (0, total - n)).reshape(rows, LANES)
    kernel = functools.partial(_huber_sum_kernel, delta=delta)
    return _sum_pallas_call(kernel, [bo2d, bt2d], tile_r, tiles_per_core)


def detection_loss(cls_outputs, box_outputs, cls_targets, box_targets,
                   num_positives, *, num_classes, alpha, gamma, delta,
                   box_loss_weight):
    """Pallas-backed equivalent of DetectionLoss.forward."""
    num_positives_sum = jnp.sum(num_positives.astype(jnp.float32)) + 1.0

    logit_chunks, code_chunks, bo_chunks, bt_chunks = [], [], [], []
    for l in range(len(cls_outputs)):
        ct = cls_targets[l]                                   # [B,H,W,A] int32
        # compact int8 code per class slot: 1=positive, 0=negative, -1=ignore.
        oh = (ct[..., None] ==
              jnp.arange(num_classes, dtype=ct.dtype)).astype(jnp.int8)
        code = jnp.where((ct == -2)[..., None], jnp.int8(-1), oh)
        code_chunks.append(code.reshape(-1))

        logit_chunks.append(
            jnp.transpose(cls_outputs[l], (0, 2, 3, 1))
            .reshape(-1).astype(jnp.float32))

        bo_chunks.append(
            jnp.transpose(box_outputs[l], (0, 2, 3, 1))
            .reshape(-1).astype(jnp.float32))
        bt_chunks.append(box_targets[l].reshape(-1).astype(jnp.float32))

    # all levels fused into one stream per loss -> exactly 2 pallas_calls
    logits_flat = jnp.concatenate(logit_chunks)
    code_flat = jnp.concatenate(code_chunks)
    bo_flat = jnp.concatenate(bo_chunks)
    bt_flat = jnp.concatenate(bt_chunks)

    cls_sum = _focal_sum(logits_flat, code_flat, alpha, gamma)
    box_sum = _huber_sum(bo_flat, bt_flat, delta)

    cls_loss = cls_sum / num_positives_sum
    box_loss = box_sum / (num_positives_sum * 4.0)
    total_loss = cls_loss + box_loss_weight * box_loss
    return total_loss, cls_loss, box_loss


# --------------------------- pure-JAX reference -----------------------------

def _ref_detection_loss(cls_outputs, box_outputs, cls_targets, box_targets,
                        num_positives, *, num_classes, alpha, gamma, delta,
                        box_loss_weight):
    nps = jnp.sum(num_positives.astype(jnp.float32)) + 1.0
    cls_losses, box_losses = [], []
    for l in range(len(cls_outputs)):
        ct = cls_targets[l]
        non_neg = ct >= 0
        oh = jax.nn.one_hot(jnp.where(non_neg, ct, 0), num_classes,
                            dtype=jnp.float32)
        oh = jnp.where(non_neg[..., None], oh, 0.0)
        B, H, W, A, C = oh.shape
        oh = oh.reshape(B, H, W, A * C)
        x = jnp.transpose(cls_outputs[l], (0, 2, 3, 1)).astype(jnp.float32)
        t = oh
        ce = jnp.maximum(x, 0.0) - x * t + jnp.log1p(jnp.exp(-jnp.abs(x)))
        mod = jnp.exp(gamma * t * (-x) - gamma * jnp.log1p(jnp.exp(-x)))
        loss = mod * ce
        w = jnp.where(t == 1.0, alpha * loss, (1.0 - alpha) * loss) / nps
        w = w.reshape(B, H, W, A, C) * (ct != -2)[..., None].astype(jnp.float32)
        cls_losses.append(jnp.sum(w))
        bo = jnp.transpose(box_outputs[l], (0, 2, 3, 1)).astype(jnp.float32)
        bt = box_targets[l].astype(jnp.float32)
        err = jnp.abs(bo - bt)
        quad = jnp.minimum(err, delta)
        hl = (0.5 * quad * quad + delta * (err - quad)) * (bt != 0.0)
        box_losses.append(jnp.sum(hl) / (nps * 4.0))
    cl = jnp.sum(jnp.stack(cls_losses))
    bl = jnp.sum(jnp.stack(box_losses))
    return cl + box_loss_weight * bl, cl, bl


# --------------------------------- main --------------------------------------

if __name__ == "__main__":
    # config (synthetic, deterministic)
    num_classes = 4
    alpha, gamma, delta, box_loss_weight = 0.25, 2.0, 0.1, 50.0
    A = 3                         # anchors per location
    B = 2
    level_hw = [(8, 8), (4, 4)]   # two feature levels

    key = jax.random.PRNGKey(0)
    cls_outputs, box_outputs, cls_targets, box_targets = [], [], [], []
    for (H, W) in level_hw:
        key, k1, k2, k3, k4, k5 = jax.random.split(key, 6)
        cls_outputs.append(
            jax.random.normal(k1, (B, A * num_classes, H, W), jnp.float32))
        box_outputs.append(
            jax.random.normal(k2, (B, A * 4, H, W), jnp.float32))
        cls_targets.append(
            jax.random.randint(k3, (B, H, W, A), -2, num_classes, jnp.int32))
        bt = jax.random.normal(k4, (B, H, W, A * 4), jnp.float32)
        drop = jax.random.uniform(k5, (B, H, W, A * 4)) < 0.3
        box_targets.append(jnp.where(drop, 0.0, bt))
    key, kn = jax.random.split(key)
    num_positives = jax.random.uniform(kn, (B,), jnp.float32) * 5.0 + 1.0

    total, cls_l, box_l = detection_loss(
        cls_outputs, box_outputs, cls_targets, box_targets, num_positives,
        num_classes=num_classes, alpha=alpha, gamma=gamma, delta=delta,
        box_loss_weight=box_loss_weight)
    jax.block_until_ready((total, cls_l, box_l))

    r_total, r_cls, r_box = _ref_detection_loss(
        cls_outputs, box_outputs, cls_targets, box_targets, num_positives,
        num_classes=num_classes, alpha=alpha, gamma=gamma, delta=delta,
        box_loss_weight=box_loss_weight)
    assert jnp.allclose(total, r_total, rtol=1e-4, atol=1e-5), (total, r_total)
    assert jnp.allclose(cls_l, r_cls, rtol=1e-4, atol=1e-5), (cls_l, r_cls)
    assert jnp.allclose(box_l, r_box, rtol=1e-4, atol=1e-5), (box_l, r_box)

    print("KERNEL_OK")
</pallas_src>

<mosaic_0001>
module attributes {stable_mosaic.version = 11 : i64} {
  func.func @_focal_sum_kernel(%arg0: i32, %arg1: i32, %arg2: memref<32x512xf32, #tpu.memory_space<vmem>>, %arg3: memref<32x512xi8, #tpu.memory_space<vmem>>, %arg4: memref<8x128xf32, #tpu.memory_space<vmem>>, %arg5: memref<32x512xf32, #tpu.memory_space<vmem>>) attributes {dimension_semantics = [#tpu.dimension_semantics<parallel>, #tpu.dimension_semantics<arbitrary>], iteration_bounds = array<i64: 2, 1>, scalar_prefetch = 0 : i64, scratch_operands = 1 : i64, tpu.core_type = #tpu.core_type<tc>, window_params = [{transform_indices = @transform_0, window_bounds = array<i64: 32, 512>}, {transform_indices = @transform_1, window_bounds = array<i64: 32, 512>}, {transform_indices = @transform_2, window_bounds = array<i64: 8, 128>}]} {
    %c0_i32 = arith.constant 0 : i32
    %0 = arith.cmpi eq, %arg1, %c0_i32 : i32
    %1 = arith.extui %0 : i1 to i32
    %c0_i32_0 = arith.constant 0 : i32
    %2 = arith.cmpi ne, %1, %c0_i32_0 : i32
    scf.if %2 {
      %cst_19 = arith.constant 0.000000e+00 : f32
      %49 = vector.broadcast %cst_19 : f32 to vector<32x512xf32>
      %c0_20 = arith.constant 0 : index
      %c0_21 = arith.constant 0 : index
      %50 = vector.load %arg5[%c0_20, %c0_21] : memref<32x512xf32, #tpu.memory_space<vmem>>, vector<32x512xf32>
      tpu.vector_store %arg5[%c0_20, %c0_21], %49 {strides = array<i32>} : memref<32x512xf32, #tpu.memory_space<vmem>>, vector<32x512xf32>,
    } else {
    }
    %c0 = arith.constant 0 : index
    %c0_1 = arith.constant 0 : index
    %3 = vector.load %arg2[%c0, %c0_1] : memref<32x512xf32, #tpu.memory_space<vmem>>, vector<32x512xf32>
    %c0_2 = arith.constant 0 : index
    %c0_3 = arith.constant 0 : index
    %4 = vector.load %arg3[%c0_2, %c0_3] : memref<32x512xi8, #tpu.memory_space<vmem>>, vector<32x512xi8>
    %5 = arith.sitofp %4 : vector<32x512xi8> to vector<32x512xf32>
    %cst = arith.constant 5.000000e-01 : f32
    %6 = vector.broadcast %cst : f32 to vector<32x512xf32>
    %7 = arith.cmpf ogt, %5, %6 : vector<32x512xf32>
    %8 = arith.extui %7 : vector<32x512xi1> to vector<32x512xi32>
    %9 = arith.sitofp %8 : vector<32x512xi32> to vector<32x512xf32>
    %cst_4 = arith.constant -5.000000e-01 : f32
    %10 = vector.broadcast %cst_4 : f32 to vector<32x512xf32>
    %11 = arith.cmpf ogt, %5, %10 : vector<32x512xf32>
    %12 = arith.extui %11 : vector<32x512xi1> to vector<32x512xi32>
    %13 = arith.sitofp %12 : vector<32x512xi32> to vector<32x512xf32>
    %14 = math.absf %3 : vector<32x512xf32>
    %cst_5 = arith.constant 0.000000e+00 : f32
    %15 = vector.broadcast %cst_5 : f32 to vector<32x512xf32>
    %16 = arith.subf %15, %14 : vector<32x512xf32>
    %17 = math.exp %16 : vector<32x512xf32>
    %18 = math.log1p %17 : vector<32x512xf32>
    %cst_6 = arith.constant 0.000000e+00 : f32
    %19 = vector.broadcast %cst_6 : f32 to vector<32x512xf32>
    %20 = arith.maximumf %3, %19 : vector<32x512xf32>
    %21 = arith.mulf %3, %9 : vector<32x512xf32>
    %22 = arith.subf %20, %21 : vector<32x512xf32>
    %23 = arith.addf %22, %18 : vector<32x512xf32>
    %cst_7 = arith.constant -2.000000e+00 : f32
    %24 = vector.broadcast %cst_7 : f32 to vector<32x512xf32>
    %25 = arith.mulf %24, %9 : vector<32x512xf32>
    %26 = arith.mulf %25, %3 : vector<32x512xf32>
    %cst_8 = arith.constant 0.000000e+00 : f32
    %27 = vector.broadcast %cst_8 : f32 to vector<32x512xf32>
    %28 = arith.subf %27, %3 : vector<32x512xf32>
    %cst_9 = arith.constant 0.000000e+00 : f32
    %29 = vector.broadcast %cst_9 : f32 to vector<32x512xf32>
    %30 = arith.maximumf %28, %29 : vector<32x512xf32>
    %31 = arith.addf %30, %18 : vector<32x512xf32>
    %cst_10 = arith.constant 2.000000e+00 : f32
    %32 = vector.broadcast %cst_10 : f32 to vector<32x512xf32>
    %33 = arith.mulf %32, %31 : vector<32x512xf32>
    %34 = arith.subf %26, %33 : vector<32x512xf32>
    %35 = math.exp %34 : vector<32x512xf32>
    %36 = arith.mulf %35, %23 : vector<32x512xf32>
    %cst_11 = arith.constant -5.000000e-01 : f32
    %37 = vector.broadcast %cst_11 : f32 to vector<32x512xf32>
    %38 = arith.mulf %37, %9 : vector<32x512xf32>
    %cst_12 = arith.constant 7.500000e-01 : f32
    %39 = vector.broadcast %cst_12 : f32 to vector<32x512xf32>
    %40 = arith.addf %39, %38 : vector<32x512xf32>
    %c0_13 = arith.constant 0 : index
    %c0_14 = arith.constant 0 : index
    %41 = vector.load %arg5[%c0_13, %c0_14] : memref<32x512xf32, #tpu.memory_space<vmem>>, vector<32x512xf32>
    %42 = arith.mulf %36, %40 : vector<32x512xf32>
    %43 = arith.mulf %42, %13 : vector<32x512xf32>
    %44 = arith.addf %41, %43 : vector<32x512xf32>
    %c0_15 = arith.constant 0 : index
    %c0_16 = arith.constant 0 : index
    %45 = vector.load %arg5[%c0_15, %c0_16] : memref<32x512xf32, #tpu.memory_space<vmem>>, vector<32x512xf32>
    tpu.vector_store %arg5[%c0_15, %c0_16], %44 {strides = array<i32>} : memref<32x512xf32, #tpu.memory_space<vmem>>, vector<32x512xf32>,
    %c0_i32_17 = arith.constant 0 : i32
    %46 = arith.cmpi eq, %arg1, %c0_i32_17 : i32
    %47 = arith.extui %46 : i1 to i32
    %c0_i32_18 = arith.constant 0 : i32
    %48 = arith.cmpi ne, %47, %c0_i32_18 : i32
    scf.if %48 {
      %cst_19 = arith.constant 0.000000e+00 : f32
      %49 = vector.broadcast %cst_19 : f32 to vector<8x128xf32>
      %c0_20 = arith.constant 0 : index
      %c0_21 = arith.constant 0 : index
      %50 = vector.load %arg5[%c0_20, %c0_21] : memref<32x512xf32, #tpu.memory_space<vmem>>, vector<32x512xf32>
      %51 = vector.shape_cast %50 : vector<32x512xf32> to vector<1x32x512xf32>
      %cst_22 = arith.constant dense<0.000000e+00> : vector<1xf32>
      %52 = vector.multi_reduction <add>, %51, %cst_22 [1, 2] : vector<1x32x512xf32> to vector<1xf32>
      %53 = vector.shape_cast %52 : vector<1xf32> to vector<1x1x1xf32>
      %54 = vector.extract %53[0, 0, 0] : f32 from vector<1x1x1xf32>
      %55 = vector.broadcast %54 : f32 to vector<8x128xf32>
      %56 = arith.addf %49, %55 : vector<8x128xf32>
      %c0_23 = arith.constant 0 : index
      %c0_24 = arith.constant 0 : index
      %57 = vector.load %arg4[%c0_23, %c0_24] : memref<8x128xf32, #tpu.memory_space<vmem>>, vector<8x128xf32>
      tpu.vector_store %arg4[%c0_23, %c0_24], %56 {strides = array<i32>} : memref<8x128xf32, #tpu.memory_space<vmem>>, vector<8x128xf32>,
    } else {
    }
    return
  }
  func.func @transform_0(%arg0: i32, %arg1: i32) -> (i32, i32) {
    %c1_i32 = arith.constant 1 : i32
    %0 = arith.muli %arg0, %c1_i32 : i32
    %1 = arith.addi %0, %arg1 : i32
    %c0_i32 = arith.constant 0 : i32
    %c0_i32_0 = arith.constant 0 : i32
    return %1, %c0_i32 : i32, i32
  }
  func.func @transform_1(%arg0: i32, %arg1: i32) -> (i32, i32) {
    %c1_i32 = arith.constant 1 : i32
    %0 = arith.muli %arg0, %c1_i32 : i32
    %1 = arith.addi %0, %arg1 : i32
    %c0_i32 = arith.constant 0 : i32
    %c0_i32_0 = arith.constant 0 : i32
    return %1, %c0_i32 : i32, i32
  }
  func.func @transform_2(%arg0: i32, %arg1: i32) -> (i32, i32) {
    %c0_i32 = arith.constant 0 : i32
    %c0_i32_0 = arith.constant 0 : i32
    return %arg0, %c0_i32 : i32, i32
  }
}

</mosaic_0001>

<bundles_post_ra>
// kernel: tpu_custom_call.1
= control target key start
LH: loop header
LB: loop body
LE: loop exit
PB: predicated region body
PF: predicated region fallthrough
CT: control target
= control target key end

     0   :  { %7 = vsyncpa [#allocation4], 0  ;;  %s2486_s0 = inlined_call_operand.hbm [shape: f32[64,512], index: 0, kind: input, shape index: {}]   ;;  %s2487_s1 = inlined_call_operand.hbm [shape: s8[64,512], index: 1, kind: input, shape index: {}]   ;;  %s2488_s2 = inlined_call_operand.hbm [shape: f32[16,128], index: 2, kind: output, shape index: {}]  }
   0x1   :  { %9 = vsyncpa [#allocation4 + $0x1], 0 }
   0x2   :  { %10 = vsyncpa [#allocation7], 0 }
   0x3   :  { %12 = vsyncpa [#allocation7 + $0x1], 0 }
   0x4   :  { %13 = vsyncpa [#allocation5], 0 }
   0x5   :  { %15 = vsyncpa [#allocation5 + $0x1], 0  ;;  %s1482_s9 = smov 0   ;;  %s1484_s10 = smov 0  }
   0x6   :  { %s1486_s11 = smov 0   ;;  %s1488_s12 = smov 0  }
   0x7   :  { %s1490_s13 = smov 0   ;;  %s1492_s14 = smov 0  }
   0x8 LB: > { %s1097_s15 = sadd.s32 4294967295, %s1459_s14   ;;  %s1098_s16 = sadd.s32 4294967294, %s1459_s14   ;;  %s1459_s14 = sphi %s1492_s14, %s21_s14   ;;  %s1455_s13 = sphi %s1490_s13, %s2744_s13   ;;  %s1451_s12 = sphi %s1488_s12, %s2743_s12   ;;  %s1447_s11 = sphi %s1486_s11, %s2742_s11   ;;  %s1443_s10 = sphi %s1484_s10, %s2741_s10   ;;  %s1439_s9 = sphi %s1482_s9, %s2740_s9  }
   0x9   : > { %s33_s17 = sadd.s32 1, %s1455_s13  ;;  %s42_s18 = sadd.s32 1, %s1447_s11 }
   0xa   : > { %p35_p0 = scmp.ge.s32.totalorder %s33_s17, 2  ;;  %p49_p1 = scmp.ne.s32.totalorder %s1447_s11, %s1443_s10 }
   0xb   : > { %p50_p2 = scmp.eq.s32.totalorder %s1459_s14, 0  ;;  %p55_p3 = scmp.ne.s32.totalorder %s1443_s10, %s1439_s9 }
   0xc   : > { %s2746_s17 = smov (%p35_p0, %s33_s17), 0  ;;  %p56_p5 = scmp.eq.s32.totalorder %s1097_s15, 0 }
   0xd   : > { %p1523_p4 = por %p50_p2, %p49_p1  ;;  %s39_s20 = ssub.s32 %s1455_s13, %s2746_s17 }
   0xe   : > { %p107_p6 = scmp.eq.s32.totalorder %s1097_s15, 1  ;;  %p40_p7 = scmp.eq.s32.totalorder %s39_s20, 0 }
   0xf   : > { %p1529_p8 = por %p56_p5, %p55_p3  ;;  %p113_p10 = scmp.eq.s32.totalorder %s1098_s16, 1 }
  0x10   : > { %p1533_p9 = por %p107_p6, %p49_p1  ;;  %p1100_p12 = scmp.ge.s32.totalorder %s1459_s14, 2 }
  0x11   : > { %s1538_s23 = scalar_select %p40_p7, %s1447_s11, %s42_s18  }
  0x12   : > { %p1540_p11 = por %p113_p10, %p55_p3  ;;  %p1170_p13 = scmp.lt.s32.totalorder %s1459_s14, 2 }
  0x13   : > { %s1547_s25 = sand.u32 1, %s1447_s11   ;;  %s1149_s27 = sshll.u32 %s1455_s13, 11 }
  0x14   : > { %s1101_s26 = sshll.u32 %s1547_s25, 7  ;;  %s145_s30 = scalar_lea.hbm %s2486_s0, %s1149_s27 }
  0x15   : > { %s137_s3 = scalar_lea.vmem [#allocation3], %s1101_s26  ;;  %p1556_p0 = pnand %p1170_p13, %p1523_p4 }
  0x16   : > { %s146_s4 = sshll.u32 %s137_s3, 4  ;;  %p1108_p1 = scmp.ge.s32.totalorder %s1459_s14, 1  ;;  %s147_s4 = int_to_ptr.vmem [resolvable:$true] %s146_s4 }
  0x17   : > { %s134_s6 = scalar_lea.sflag [#allocation4], %s1547_s25  ;;  %p1321_p2 = pneg %p1556_p0 }
  0x18   : > { %s1332_s7 = scalar_lea.vmem %s147_s4, 2048  ;;  %s1461_s8 = smov [#allocation3]  }
  0x19   : > { %p1333_p3 = scmp.ne.s32.totalorder %s147_s4, %s1332_s7  ;;  %s1337_s15 = sshll.u32 %s1461_s8, 4  ;;  %s1338_s15 = int_to_ptr.vmem [resolvable:$false] %s1337_s15 }
  0x1a   : > { %s1339_s16 = scalar_lea.vmem %s1338_s15, 4096  ;;  %p1340_p4 = scmp.lt.s32.totalorder %s147_s4, %s1338_s15 }
  0x1b   : > { %p1335_p5 = pnand %p1333_p3, %p1321_p2  ;;  %p1341_p7 = scmp.lt.s32.totalorder %s1339_s16, %s1332_s7 }
  0x1d   : > { %p1336_p6 = pneg %p1335_p5  ;;  %p1342_p10 = por %p1341_p7, %p1340_p4 }
  0x1f   : > { %p1343_p13 = pnand %p1342_p10, %p1336_p6 }
  0x21   : > { %1346 = shalt.err (!%p1343_p13)
}
  0x22   : > { %s1462_s18 = smov 512   ;;  %s1463_s19 = smov 32  }
  0x23   : > { %1162 = dma.hbm_to_vmem [thread:$0]  (!%p1556_p0), %s145_s30, 2048, %s147_s4, %s134_s6, %s1462_s18, %s1462_s18, %s1463_s19  }
  0x24   : > { %p174_p3 = scmp.lt.s32.totalorder %s1459_s14, 3  ;;  %s1105_s20 = sshll.u32 %s1547_s25, 5 }
  0x25   : > { %s1150_s26 = sshll.u32 %s1455_s13, 9  ;;  %s160_s7 = scalar_lea.vmem [#allocation6], %s1105_s20 }
  0x26   : > { %p1574_p5 = pnand %p1108_p1, %p174_p3  ;;  %s167_s3 = scalar_lea.hbm %s2487_s1, %s1150_s26 }
  0x27   : > { %s169_s8 = sshll.u32 %s160_s7, 4  ;;  %s157_s15 = scalar_lea.sflag [#allocation7], %s1547_s25  ;;  %s170_s8 = int_to_ptr.vmem [resolvable:$true] %s169_s8 }
  0x28   : > { %s1360_s16 = scalar_lea.vmem %s170_s8, 512  ;;  %s1464_s30 = smov [#allocation6]  }
  0x29   : > { %p1361_p6 = scmp.ne.s32.totalorder %s170_s8, %s1360_s16  ;;  %s1365_s4 = sshll.u32 %s1464_s30, 4  ;;  %s1366_s4 = int_to_ptr.vmem [resolvable:$false] %s1365_s4 }
  0x2a   : > { %s1367_s6 = scalar_lea.vmem %s1366_s4, 1024  ;;  %p1368_p1 = scmp.lt.s32.totalorder %s170_s8, %s1366_s4 }
  0x2b   : > { %p1363_p4 = pnand %p1361_p6, %p1321_p2  ;;  %p1369_p10 = scmp.lt.s32.totalorder %s1367_s6, %s1360_s16 }
  0x2d   : > { %p1364_p7 = pneg %p1363_p4  ;;  %p1370_p13 = por %p1369_p10, %p1368_p1 }
  0x2f   : > { %p1371_p3 = pnand %p1370_p13, %p1364_p7 }
  0x31   : > { %1374 = shalt.err (!%p1371_p3)
}
  0x32   : > { %1165 = dma.hbm_to_vmem [thread:$0]  (!%p1556_p0), %s167_s3, 512, %s170_s8, %s157_s15  }
  0x33   : > { %178 = sbr.rel (%p1574_p5) target bundleno = 443 (0x1bb), region = 28 }
  0x38   : > { %s1590_s25 = sand.u32 1, %s1443_s10  }
  0x39   : > { %s1109_s18 = sshll.u32 %s1590_s25, 7  ;;  %s181_s19 = scalar_lea.sflag [#allocation4], %s1590_s25 }
  0x3a   : > { %s1594_s20 = scalar_lea.vmem [#allocation3], %s1109_s18 }
  0x3b   : > { %1426 = dma.done.wait (%p1529_p8), %s181_s19, 2048  }
  0x3c   : > { %1428 = vsyncadd (%p1529_p8), %s181_s19, 4294965248  ;;  %s1110_s5 = sshll.u32 %s1590_s25, 5  ;;  %s190_s26 = scalar_lea.sflag [#allocation7], %s1590_s25 }
  0x3d   : > { %s193_s27 = scalar_lea.vmem [#allocation6], %s1110_s5 }
  0x3e   : > { %1430 = dma.done.wait (%p1529_p8), %s190_s26, 512  }
  0x3f   : > { %1432 = vsyncadd (%p1529_p8), %s190_s26, 4294966784  ;;  %v1607_v0 = vld [vmem:[%s1594_s20] sm:$0xff]  ;;  %v1610_v1 = vld [vmem:[%s1594_s20 + $0x8] sm:$0xff]  ;;  %v2491_v51 = vmov 0.0   ;;  %s1111_s21 = sshll.u32 %s1590_s25, 3  ;;  %s1145_s28 = sshll.u32 %s1451_s12, 7 }
  0x40   : > { %2560 = vst [vmem:[#allocation12_spill] sm:$0xff] %v1607_v0  ;;  %2561 = vst [vmem:[#allocation13_spill] sm:$0xff] %v1610_v1  ;;  %v1613_v2 = vld [vmem:[%s1594_s20 + $0x10] sm:$0xff]  ;;  %v390_v3 = vand.u32 2147483647, %v1607_v0  ;;  %v1618_v5 = vld [vmem:[%s1594_s20 + $0x18] sm:$0xff]  ;;  %s2444_s15 = scalar_lea.hbm %s2488_s2, %s1145_s28 }
  0x41   : > { %2562 = vst [vmem:[#allocation14_spill] sm:$0xff] %v1613_v2  ;;  %v391_v4 = vand.u32 2147483647, %v1610_v1  ;;  %2563 = vst [vmem:[#allocation15_spill] sm:$0xff] %v1618_v5  ;;  %v392_v6 = vand.u32 2147483647, %v1613_v2 }
  0x42   : > { %v1622_v7 = vld [vmem:[%s1594_s20 + $0x20] sm:$0xff]  ;;  %v259_v9 = vld [vmem:[%s193_s27 + $0x8] sm:$0xff]  ;;  %v260_v10 = vld [vmem:[%s193_s27 + $0x10] sm:$0xff]  ;;  %v393_v13 = vand.u32 2147483647, %v1618_v5  ;;  %v1626_v14 = vsub.f32 0.0, %v390_v3 }
  0x43   : > { %v258_v8 = vld [vmem:[%s193_s27] sm:$0xff]  ;;  %v261_v11 = vld [vmem:[%s193_s27 + $0x18] sm:$0xff]  ;;  %v1628_v15 = vsub.f32 0.0, %v391_v4  ;;  %v263_v18 = vunpack.c.0.s8 %v259_v9  ;;  %v394_v19 = vand.u32 2147483647, %v1622_v7  ;;  %v1632_v20 = vsub.f32 0.0, %v392_v6 }
  0x44   : > { %v262_v17 = vunpack.c.0.s8 %v258_v8  ;;  %v264_v21 = vunpack.c.0.s8 %v260_v10  ;;  %v265_v22 = vunpack.c.0.s8 %v261_v11  ;;  %v266_v23 = vunpack.c.1.s8 %v258_v8  ;;  %v1713_v58 = vld [vmem:[%s1594_s20 + $0x28] sm:$0xff]  ;;  %v1736_v63 = vld [vmem:[%s1594_s20 + $0x30] sm:$0xff]  ;;  %v1834_v12 = vld [vmem:[%s1594_s20 + $0x78] sm:$0xff]  ;;  %s218_s29 = scalar_lea.vmem [#allocation8], %s1111_s21  ;;  %s981_s30 = scalar_lea.sflag [#allocation5], %s1590_s25 }
  0x45   : > { %v267_v24 = vunpack.c.1.s8 %v259_v9  ;;  %v268_v25 = vunpack.c.1.s8 %v260_v10  ;;  %v269_v26 = vunpack.c.1.s8 %v261_v11  ;;  %v270_v27 = vunpack.c.2.s8 %v258_v8  ;;  %2594 = vst [vmem:[#allocation46_spill] sm:$0xff] %v1834_v12  ;;  %s994_s3 = sshll.u32 %s218_s29, 4  ;;  %s1466_s6 = smov [#allocation8]   ;;  %s995_s3 = int_to_ptr.vmem [resolvable:$true] %s994_s3 }
  0x46   : > { %v271_v28 = vunpack.c.2.s8 %v259_v9  ;;  %v272_v29 = vunpack.c.2.s8 %v260_v10  ;;  %v273_v30 = vunpack.c.2.s8 %v261_v11  ;;  %v274_v31 = vunpack.c.3.s8 %v258_v8  ;;  %s1375_s4 = scalar_lea.vmem %s995_s3, 128  ;;  %s1379_s18 = sshll.u32 %s1466_s6, 4  ;;  %s1380_s18 = int_to_ptr.vmem [resolvable:$false] %s1379_s18 }
  0x47   : > { %v275_v32 = vunpack.c.3.s8 %v259_v9  ;;  %v276_v33 = vunpack.c.3.s8 %v260_v10  ;;  %v277_v34 = vunpack.c.3.s8 %v261_v11  ;;  %v1634_v35 = vcvt.s32.f32 %v262_v17  ;;  %v1759_v9 = vld [vmem:[%s1594_s20 + $0x38] sm:$0xff]  ;;  %v1762_v10 = vld [vmem:[%s1594_s20 + $0x40] sm:$0xff]  ;;  %p1376_p8 = scmp.ne.s32.totalorder %s995_s3, %s1375_s4  ;;  %s1381_s12 = scalar_lea.vmem %s1380_s18, 256 }
  0x48   : > { %v1636_v36 = vcvt.s32.f32 %v263_v18  ;;  %v1638_v37 = vcvt.s32.f32 %v264_v21  ;;  %v1640_v38 = vcvt.s32.f32 %v265_v22  ;;  %v1642_v39 = vcvt.s32.f32 %v266_v23  ;;  %v1777_v18 = vld [vmem:[%s1594_s20 + $0x48] sm:$0xff]  ;;  %v1784_v22 = vld [vmem:[%s1594_s20 + $0x50] sm:$0xff]  ;;  %v1787_v23 = vld [vmem:[%s1594_s20 + $0x58] sm:$0xff]  ;;  %p1382_p5 = scmp.lt.s32.totalorder %s995_s3, %s1380_s18  ;;  %p1383_p6 = scmp.lt.s32.totalorder %s1381_s12, %s1375_s4 }
  0x49   : > { %v1644_v40 = vcvt.s32.f32 %v267_v24  ;;  %v1646_v41 = vcvt.s32.f32 %v268_v25  ;;  %v1648_v42 = vcvt.s32.f32 %v269_v26  ;;  %v1650_v43 = vcvt.s32.f32 %v270_v27  ;;  %p1377_p0 = pnand %p1376_p8, %p1533_p9 }
  0x4a   : > { %v1652_v44 = vcvt.s32.f32 %v271_v28  ;;  %v1654_v45 = vcvt.s32.f32 %v272_v29  ;;  %v1656_v46 = vcvt.s32.f32 %v273_v30  ;;  %v1658_v47 = vcvt.s32.f32 %v274_v31  ;;  %v1809_v31 = vld [vmem:[%s1594_s20 + $0x60] sm:$0xff]  ;;  %p1384_p4 = por %p1383_p6, %p1382_p5 }
  0x4b   : > { %v1660_v48 = vcvt.s32.f32 %v275_v32  ;;  %v1662_v49 = vcvt.s32.f32 %v276_v33  ;;  %v1664_v50 = vcvt.s32.f32 %v277_v34  ;;  %vm294_vm0 = vcmp.gt.f32.partialorder %v1634_v35, 0.5  ;;  %2588 = vst [vmem:[#allocation40_spill] sm:$0xff] %v1809_v31  ;;  %v1812_v32 = vld [vmem:[%s1594_s20 + $0x68] sm:$0xff]  ;;  %v1830_v34 = vld [vmem:[%s1594_s20 + $0x70] sm:$0xff]  ;;  %p1378_p2 = pneg %p1377_p0 }
  0x4c   : > { %2564 = vst [vmem:[#allocation16_spill] sm:$0xff] %v1652_v44  ;;  %2565 = vst [vmem:[#allocation17_spill] sm:$0xff] %v1654_v45  ;;  %vm295_vm1 = vcmp.gt.f32.partialorder %v1636_v36, 0.5  ;;  %vm296_vm2 = vcmp.gt.f32.partialorder %v1638_v37, 0.5  ;;  %vm297_vm3 = vcmp.gt.f32.partialorder %v1640_v38, 0.5  ;;  %vm298_vm4 = vcmp.gt.f32.partialorder %v1642_v39, 0.5 }
  0x4d   : > { %2566 = vst [vmem:[#allocation18_spill] sm:$0xff] %v1656_v46  ;;  %2567 = vst [vmem:[#allocation19_spill] sm:$0xff] %v1658_v47  ;;  %vm299_vm5 = vcmp.gt.f32.partialorder %v1644_v40, 0.5  ;;  %vm300_vm6 = vcmp.gt.f32.partialorder %v1646_v41, 0.5  ;;  %vm301_vm7 = vcmp.gt.f32.partialorder %v1648_v42, 0.5  ;;  %vm302_vm8 = vcmp.gt.f32.partialorder %v1650_v43, 0.5  ;;  %p1385_p7 = pnand %p1384_p4, %p1378_p2 }
  0x4e   : > { %2568 = vst [vmem:[#allocation20_spill] sm:$0xff] %v1660_v48  ;;  %2569 = vst [vmem:[#allocation21_spill] sm:$0xff] %v1662_v49  ;;  %vm303_vm9 = vcmp.gt.f32.partialorder %v1652_v44, 0.5  ;;  %vm304_vm10 = vcmp.gt.f32.partialorder %v1654_v45, 0.5  ;;  %vm305_vm11 = vcmp.gt.f32.partialorder %v1656_v46, 0.5  ;;  %vm306_vm12 = vcmp.gt.f32.partialorder %v1658_v47, 0.5 }
  0x4f   : > { %2570 = vst [vmem:[#allocation22_spill] sm:$0xff] %v1664_v50  ;;  %vm307_vm13 = vcmp.gt.f32.partialorder %v1660_v48, 0.5  ;;  %vm308_vm14 = vcmp.gt.f32.partialorder %v1662_v49, 0.5  ;;  %vm309_vm15 = vcmp.gt.f32.partialorder %v1664_v50, 0.5  ;;  %v1685_v52 = vsel %vm294_vm0, 1.0, %v2491_v51  ;;  %2589 = vst [vmem:[#allocation41_spill] sm:$0xff] %v1812_v32 }
  0x50   : > { %2571 = vst [vmem:[#allocation23_spill] sm:$0xff] %v1685_v52  ;;  %v1690_v53 = vsel %vm295_vm1, 1.0, %v2491_v51  ;;  %v1695_v54 = vsel %vm296_vm2, 1.0, %v2491_v51  ;;  %v1700_v55 = vsel %vm297_vm3, 1.0, %v2491_v51  ;;  %v1705_v56 = vsel %vm298_vm4, 1.0, %v2491_v51  ;;  %2593 = vst [vmem:[#allocation45_spill] sm:$0xff] %v1830_v34 }
  0x51   : > { %2572 = vst [vmem:[#allocation24_spill] sm:$0xff] %v1690_v53  ;;  %2573 = vst [vmem:[#allocation25_spill] sm:$0xff] %v1695_v54  ;;  %v1710_v57 = vsel %vm299_vm5, 1.0, %v2491_v51  ;;  %v1718_v59 = vsel %vm300_vm6, 1.0, %v2491_v51  ;;  %v1723_v60 = vsel %vm301_vm7, 1.0, %v2491_v51  ;;  %v1728_v61 = vsel %vm302_vm8, 1.0, %v2491_v51 }
  0x52   : > { %2574 = vst [vmem:[#allocation26_spill] sm:$0xff] %v1700_v55  ;;  %2575 = vst [vmem:[#allocation27_spill] sm:$0xff] %v1705_v56  ;;  %v1733_v62 = vsel %vm303_vm9, 1.0, %v2491_v51  ;;  %v1741_v3 = vsel %vm304_vm10, 1.0, %v2491_v51  ;;  %v1746_v4 = vsel %vm305_vm11, 1.0, %v2491_v51  ;;  %v1751_v6 = vsel %vm306_vm12, 1.0, %v2491_v51 }
  0x53   : > { %2576 = vst [vmem:[#allocation28_spill] sm:$0xff] %v1710_v57  ;;  %2577 = vst [vmem:[#allocation29_spill] sm:$0xff] %v1718_v59  ;;  %v1756_v8 = vsel %vm307_vm13, 1.0, %v2491_v51  ;;  %v1767_v11 = vsel %vm308_vm14, 1.0, %v2491_v51  ;;  %v1772_v17 = vsel %vm309_vm15, 1.0, %v2491_v51  ;;  %vm342_vm0 = vcmp.gt.f32.partialorder %v1634_v35, -0.5 }
  0x54   : > { %2578 = vst [vmem:[#allocation30_spill] sm:$0xff] %v1723_v60  ;;  %2579 = vst [vmem:[#allocation31_spill] sm:$0xff] %v1728_v61  ;;  %vm343_vm1 = vcmp.gt.f32.partialorder %v1636_v36, -0.5  ;;  %vm344_vm2 = vcmp.gt.f32.partialorder %v1638_v37, -0.5  ;;  %vm345_vm3 = vcmp.gt.f32.partialorder %v1640_v38, -0.5  ;;  %vm346_vm4 = vcmp.gt.f32.partialorder %v1642_v39, -0.5 }
  0x55   : > { %2580 = vst [vmem:[#allocation32_spill] sm:$0xff] %v1733_v62  ;;  %2581 = vst [vmem:[#allocation33_spill] sm:$0xff] %v1741_v3  ;;  %v395_v21 = vand.u32 2147483647, %v1713_v58  ;;  %vm347_vm5 = vcmp.gt.f32.partialorder %v1644_v40, -0.5  ;;  %v409_v25 = vsub.f32 0.0, %v393_v13 }
  0x56   : > { %2582 = vst [vmem:[#allocation34_spill] sm:$0xff] %v1746_v4  ;;  %2583 = vst [vmem:[#allocation35_spill] sm:$0xff] %v1751_v6  ;;  %v396_v24 = vand.u32 2147483647, %v1736_v63  ;;  %v422_v26 = vmul.f32 1.442695, %v1626_v14 }
  0x57   : > { %2584 = vst [vmem:[#allocation36_spill] sm:$0xff] %v1756_v8  ;;  %2585 = vst [vmem:[#allocation37_spill] sm:$0xff] %v1767_v11  ;;  %vm348_vm6 = vcmp.gt.f32.partialorder %v1646_v41, -0.5  ;;  %vm349_vm7 = vcmp.gt.f32.partialorder %v1648_v42, -0.5  ;;  %v397_v27 = vand.u32 2147483647, %v1759_v9 }
  0x58   : > { %2586 = vst [vmem:[#allocation38_spill] sm:$0xff] %v1772_v17  ;;  %v424_v28 = vmul.f32 1.442695, %v1628_v15  ;;  %vm350_vm8 = vcmp.gt.f32.partialorder %v1650_v43, -0.5  ;;  %v1802_v29 = vsel %vm342_vm0, 1.0, %v2491_v51  ;;  %v410_v14 = vsub.f32 0.0, %v394_v19 }
  0x59   : > { %2587 = vst [vmem:[#allocation39_spill] sm:$0xff] %v1802_v29  ;;  %v398_v13 = vand.u32 2147483647, %v1762_v10  ;;  %v426_v30 = vmul.f32 1.442695, %v1632_v20  ;;  %v1817_v15 = vsel %vm343_vm1, 1.0, %v2491_v51  ;;  %1223 = vpow2.f32 %v422_v26 }
  0x5a   : > { %2590 = vst [vmem:[#allocation42_spill] sm:$0xff] %v1817_v15  ;;  %v1822_v33 = vsel %vm344_vm2, 1.0, %v2491_v51  ;;  %v1827_v19 = vsel %vm345_vm3, 1.0, %v2491_v51  ;;  %v411_v20 = vsub.f32 0.0, %v395_v21  ;;  %v399_v35 = vand.u32 2147483647, %v1777_v18 }
  0x5b   : > { %2591 = vst [vmem:[#allocation43_spill] sm:$0xff] %v1822_v33  ;;  %2592 = vst [vmem:[#allocation44_spill] sm:$0xff] %v1827_v19  ;;  %v412_v16 = vsub.f32 0.0, %v396_v24  ;;  %v428_v36 = vmul.f32 1.442695, %v409_v25  ;;  %v413_v49 = vsub.f32 0.0, %v397_v27  ;;  %1225 = vpow2.f32 %v424_v28 }
  0x5c   : > { %v400_v50 = vand.u32 2147483647, %v1784_v22  ;;  %v401_v37 = vand.u32 2147483647, %v1787_v23  ;;  %v402_v38 = vand.u32 2147483647, %v1809_v31  ;;  %1227 = vpow2.f32 %v426_v30 }
  0x5d   : > { %v414_v51 = vsub.f32 0.0, %v398_v13  ;;  %v430_v21 = vmul.f32 1.442695, %v410_v14  ;;  %v403_v48 = vand.u32 2147483647, %v1812_v32  ;;  %v415_v26 = vsub.f32 0.0, %v399_v35 }
  0x5e   : > { %v404_v47 = vand.u32 2147483647, %v1830_v34  ;;  %v432_v24 = vmul.f32 1.442695, %v411_v20  ;;  %v405_v25 = vand.u32 2147483647, %v1834_v12  ;;  %1229 = vpow2.f32 %v428_v36 }
  0x5f   : > { %v434_v46 = vmul.f32 1.442695, %v412_v16  ;;  %v2595_v19 = vmov 0.0   ;;  %v436_v14 = vmul.f32 1.442695, %v413_v49  ;;  %v416_v30 = vsub.f32 0.0, %v400_v50 }
  0x60   : > { %v1845_v27 = vsel %vm346_vm4, 1.0, %v2595_v19  ;;  %v1850_v28 = vsel %vm347_vm5, 1.0, %v2595_v19  ;;  %v1855_v13 = vsel %vm348_vm6, 1.0, %v2595_v19  ;;  %v417_v20 = vsub.f32 0.0, %v401_v37 }
  0x61   : > { %2596 = vst [vmem:[#allocation47_spill] sm:$0xff] %v1845_v27  ;;  %2597 = vst [vmem:[#allocation48_spill] sm:$0xff] %v1850_v28  ;;  %1231 = vpow2.f32 %v430_v21  ;;  %v438_v16 = vmul.f32 1.442695, %v414_v51  ;;  %v418_v35 = vsub.f32 0.0, %v402_v38  ;;  %v419_v36 = vsub.f32 0.0, %v403_v48 }
  0x62   : > { %2598 = vst [vmem:[#allocation49_spill] sm:$0xff] %v1855_v13  ;;  %v420_v39 = vsub.f32 0.0, %v404_v47  ;;  %1233 = vpow2.f32 %v432_v24  ;;  %v1860_v40 = vsel %vm349_vm7, 1.0, %v2595_v19  ;;  %v421_v28 = vsub.f32 0.0, %v405_v25 }
  0x63   : > { %2599 = vst [vmem:[#allocation50_spill] sm:$0xff] %v1860_v40  ;;  %1235 = vpow2.f32 %v434_v46  ;;  %v440_v27 = vmul.f32 1.442695, %v415_v26  ;;  %v1865_v41 = vsel %vm350_vm8, 1.0, %v2595_v19  ;;  %v614_v49 = vmul.f32 %v1685_v52, %v1607_v0 }
  0x64   : > { %2600 = vst [vmem:[#allocation51_spill] sm:$0xff] %v1865_v41  ;;  %1237 = vpow2.f32 %v436_v14  ;;  %v1871_v47 = vmul.f32 %v1690_v53, %v1610_v1  ;;  %v442_v42 = vmul.f32 1.442695, %v416_v30  ;;  %v444_v48 = vmul.f32 1.442695, %v417_v20 }
  0x65   : > { %1239 = vpow2.f32 %v438_v16  ;;  %v1875_v46 = vmul.f32 %v1695_v54, %v1613_v2  ;;  %v446_v50 = vmul.f32 1.442695, %v418_v35  ;;  %v448_v51 = vmul.f32 1.442695, %v419_v36 }
  0x66   : > { %v450_v43 = vmul.f32 1.442695, %v420_v39  ;;  %v1879_v37 = vmul.f32 %v1700_v55, %v1618_v5  ;;  %1241 = vpow2.f32 %v440_v27  ;;  %v452_v38 = vmul.f32 1.442695, %v421_v28  ;;  %v1883_v25 = vpop.eup %1223 }
  0x67   : > { %v600_v21 = vmax.f32 %v1613_v2, 0.0  ;;  %v601_v24 = vmax.f32 %v1618_v5, 0.0  ;;  %1243 = vpow2.f32 %v442_v42  ;;  %v454_v20 = vadd.f32 1.0, %v1883_v25 }
  0x68   : > { %v1889_v16 = vpop.eup %1225  ;;  %1245 = vpow2.f32 %v444_v48  ;;  %v1907_v48 = vmul.f32 %v1705_v56, %v1622_v7  ;;  %v1911_v14 = vmul.f32 %v1710_v57, %v1713_v58  ;;  %v1920_v27 = vmul.f32 %v1723_v60, %v1759_v9 }
  0x69   : > { %v1894_v36 = vpop.eup %1227  ;;  %1247 = vpow2.f32 %v446_v50  ;;  %v463_v35 = vadd.f32 1.0, %v1889_v16  ;;  %v1915_v50 = vmul.f32 %v1718_v59, %v1736_v63  ;;  %v1924_v30 = vmul.f32 %v1728_v61, %v1762_v10 }
  0x6a   : > { %1249 = vpow2.f32 %v448_v51  ;;  %v472_v42 = vadd.f32 1.0, %v1894_v36  ;;  %v457_v28 = vmul.f32 -0.5, %v1883_v25  ;;  %v1931_v41 = vmul.f32 %v1733_v62, %v1777_v18 }
  0x6b   : > { %v1902_v26 = vpop.eup %1229  ;;  %1251 = vpow2.f32 %v450_v43  ;;  %v1935_v51 = vmul.f32 %v1741_v3, %v1784_v22  ;;  %v1942_v13 = vmul.f32 %v1746_v4, %v1787_v23  ;;  %v1946_v43 = vmul.f32 %v1751_v6, %v1809_v31 }
  0x6c   : > { %1253 = vlog2.f32 %v454_v20  ;;  %v481_v40 = vadd.f32 1.0, %v1902_v26  ;;  %v1952_v33 = vmul.f32 %v1756_v8, %v1812_v32  ;;  %v1956_v20 = vmul.f32 %v1767_v11, %v1830_v34 }
  0x6d   : > { %2601 = vst [vmem:[#allocation52_spill] sm:$0xff] %v1946_v43  ;;  %1255 = vlog2.f32 %v463_v35  ;;  %v1960_v15 = vmul.f32 %v1772_v17, %v1834_v12  ;;  %v466_v29 = vmul.f32 -0.5, %v1889_v16  ;;  %v2605_v35 = vmax.f32 %v1607_v0, 0.0 }
  0x6e   : > { %v1926_v39 = vpop.eup %1231  ;;  %2602 = vst [vmem:[#allocation53_spill] sm:$0xff] %v1952_v33  ;;  %2603 = vst [vmem:[#allocation54_spill] sm:$0xff] %v1956_v20  ;;  %1257 = vlog2.f32 %v472_v42  ;;  %v458_v34 = vadd.f32 1.0, %v457_v28  ;;  %v475_v20 = vmul.f32 -0.5, %v1894_v36  ;;  %v2606_v42 = vmax.f32 %v1610_v1, 0.0 }
  0x6f   : > { %v1937_v19 = vpop.eup %1233  ;;  %2604 = vst [vmem:[#allocation55_spill] sm:$0xff] %v1960_v15  ;;  %v490_v43 = vadd.f32 1.0, %v1926_v39  ;;  %v1968_v31 = vsub.f32 %v2605_v35, %v614_v49  ;;  %1259 = vpow2.f32 %v452_v38  ;;  %v1981_v5 = vsub.f32 %v600_v21, %v1875_v46 }
  0x70   : > { %v1948_v45 = vpop.eup %1235  ;;  %v499_v12 = vadd.f32 1.0, %v1937_v19  ;;  %1261 = vlog2.f32 %v481_v40  ;;  %v1978_v32 = vsub.f32 %v2606_v42, %v1871_v47  ;;  %v460_v38 = vand.u32 2147483647, %v1883_v25 }
  0x71   : > { %v1962_v44 = vpop.eup %1237  ;;  %v508_v15 = vadd.f32 1.0, %v1948_v45  ;;  %2608 = vst [vmem:[#allocation57_spill] sm:$0xff] %v1981_v5  ;;  %v484_v28 = vmul.f32 -0.5, %v1902_v26  ;;  %v1989_v40 = vsub.f32 %v601_v24, %v1879_v37  ;;  %v467_v2 = vadd.f32 1.0, %v466_v29 }
  0x72   : > { %v1970_v33 = vpop.eup %1239  ;;  %2607 = vst [vmem:[#allocation56_spill] sm:$0xff] %v1978_v32  ;;  %v517_v35 = vadd.f32 1.0, %v1962_v44  ;;  %v469_v17 = vand.u32 2147483647, %v1889_v16  ;;  %1263 = vlog2.f32 %v490_v43  ;;  %v1996_v46 = vmul.f32 %v1883_v25, %v458_v34 }
  0x73   : > { %v1983_v49 = vpop.eup %1241  ;;  %2609 = vst [vmem:[#allocation58_spill] sm:$0xff] %v1989_v40  ;;  %v526_v47 = vadd.f32 1.0, %v1970_v33  ;;  %v476_v21 = vadd.f32 1.0, %v475_v20  ;;  %v478_v1 = vand.u32 2147483647, %v1894_v36  ;;  %1265 = vlog2.f32 %v499_v12 }
  0x74   : > { %v1993_v42 = vpop.eup %1243  ;;  %v493_v37 = vmul.f32 -0.5, %v1926_v39  ;;  %v502_v29 = vmul.f32 -0.5, %v1937_v19  ;;  %1267 = vlog2.f32 %v508_v15  ;;  %v535_v24 = vadd.f32 1.0, %v1983_v49 }
  0x75   : > { %v1999_v0 = vpop.eup %1245  ;;  %vm2006_vm9 = vcmp.lt.f32.partialorder %v460_v38, 0.0004427343  ;;  %v485_v34 = vadd.f32 1.0, %v484_v28  ;;  %v487_v25 = vand.u32 2147483647, %v1902_v26  ;;  %v511_v12 = vmul.f32 -0.5, %v1948_v45 }
  0x76   : > { %v2004_v43 = vpop.eup %1247  ;;  %1269 = vlog2.f32 %v517_v35  ;;  %v468_v20 = vmul.f32 %v1889_v16, %v467_v2  ;;  %vm2013_vm10 = vcmp.lt.f32.partialorder %v469_v17, 0.0004427343  ;;  %v520_v15 = vmul.f32 -0.5, %v1962_v44 }
  0x77   : > { %1271 = vlog2.f32 %v526_v47  ;;  %v544_v38 = vadd.f32 1.0, %v1993_v42  ;;  %v2019_v8 = vpop.eup %1249  ;;  %v477_v28 = vmul.f32 %v1894_v36, %v476_v21  ;;  %vm2022_vm11 = vcmp.lt.f32.partialorder %v478_v1, 0.0004427343 }
  0x78   : > { %v496_v35 = vand.u32 2147483647, %v1926_v39  ;;  %v529_v2 = vmul.f32 -0.5, %v1970_v33  ;;  %v553_v17 = vadd.f32 1.0, %v1999_v0  ;;  %v2029_v16 = vpop.eup %1251  ;;  %v494_v4 = vadd.f32 1.0, %v493_v37 }
  0x79   : > { %v503_v47 = vadd.f32 1.0, %v502_v29  ;;  %1273 = vlog2.f32 %v535_v24  ;;  %v562_v3 = vadd.f32 1.0, %v2004_v43  ;;  %v1254_v62 = vpop.eup %1253  ;;  %v486_v36 = vmul.f32 %v1902_v26, %v485_v34 }
  0x7a   : > { %vm2033_vm12 = vcmp.lt.f32.partialorder %v487_v25, 0.0004427343  ;;  %v505_v21 = vand.u32 2147483647, %v1937_v19  ;;  %v512_v61 = vadd.f32 1.0, %v511_v12  ;;  %v538_v60 = vmul.f32 -0.5, %v1983_v49  ;;  %v1256_v59 = vpop.eup %1255 }
  0x7b   : > { %v514_v57 = vand.u32 2147483647, %v1948_v45  ;;  %v521_v37 = vadd.f32 1.0, %v520_v15  ;;  %v523_v29 = vand.u32 2147483647, %v1962_v44  ;;  %1275 = vlog2.f32 %v544_v38  ;;  %v1258_v24 = vpop.eup %1257 }
  0x7c   : > { %v530_v56 = vadd.f32 1.0, %v529_v2  ;;  %v532_v26 = vand.u32 2147483647, %v1970_v33  ;;  %1277 = vlog2.f32 %v553_v17  ;;  %v571_v34 = vadd.f32 1.0, %v2019_v8  ;;  %v2043_v25 = vpop.eup %1259 }
  0x7d   : > { %v456_v55 = vmul.f32 0.6931472, %v1254_v62  ;;  %v495_v12 = vmul.f32 %v1926_v39, %v494_v4  ;;  %vm2046_vm13 = vcmp.lt.f32.partialorder %v496_v35, 0.0004427343  ;;  %v504_v15 = vmul.f32 %v1937_v19, %v503_v47  ;;  %v1262_v38 = vpop.eup %1261 }
  0x7e   : > { %1279 = vlog2.f32 %v562_v3  ;;  %v465_v53 = vmul.f32 0.6931472, %v1256_v59  ;;  %vm2051_vm14 = vcmp.lt.f32.partialorder %v505_v21, 0.0004427343  ;;  %v513_v17 = vmul.f32 %v1948_v45, %v512_v61 }
  0x7f   : > { %v539_v52 = vadd.f32 1.0, %v538_v60  ;;  %v541_v62 = vand.u32 2147483647, %v1983_v49  ;;  %v474_v5 = vmul.f32 0.6931472, %v1258_v24  ;;  %v547_v39 = vmul.f32 -0.5, %v1993_v42  ;;  %v1264_v59 = vpop.eup %1263 }
  0x80   : > { %vm2057_vm15 = vcmp.lt.f32.partialorder %v514_v57, 0.0004427343  ;;  %1281 = vlog2.f32 %v571_v34  ;;  %v580_v3 = vadd.f32 1.0, %v2029_v16  ;;  %v522_v19 = vmul.f32 %v1962_v44, %v521_v37  ;;  %v1266_v61 = vpop.eup %1265 }
  0x81   : > { %vm2064_vm0 = vcmp.lt.f32.partialorder %v523_v29, 0.0004427343  ;;  %v531_v45 = vmul.f32 %v1970_v33, %v530_v56  ;;  %vm2069_vm1 = vcmp.lt.f32.partialorder %v532_v26, 0.0004427343  ;;  %v589_v57 = vadd.f32 1.0, %v2043_v25  ;;  %v1268_v29 = vpop.eup %1267 }
  0x82   : > { %v2077_v47 = vsel %vm2006_vm9, %v1996_v46, %v456_v55  ;;  %v483_v21 = vmul.f32 0.6931472, %v1262_v38  ;;  %v550_v44 = vand.u32 2147483647, %v1993_v42  ;;  %v556_v37 = vmul.f32 -0.5, %v1999_v0 }
  0x83   : > { %v2083_v56 = vsel %vm2013_vm10, %v468_v20, %v465_v53  ;;  %vm2085_vm2 = vcmp.lt.f32.partialorder %v541_v62, 0.0004427343  ;;  %v565_v24 = vmul.f32 -0.5, %v2004_v43  ;;  %1283 = vlog2.f32 %v580_v3  ;;  %v1270_v40 = vpop.eup %1269 }
  0x84   : > { %v2092_v55 = vsel %vm2022_vm11, %v477_v28, %v474_v5  ;;  %v540_v46 = vmul.f32 %v1983_v49, %v539_v52  ;;  %v548_v26 = vadd.f32 1.0, %v547_v39  ;;  %v574_v34 = vmul.f32 -0.5, %v2019_v8  ;;  %v1272_v11 = vpop.eup %1271 }
  0x85   : > { %2630 = vst [vmem:[#allocation59_spill] sm:$0xff] %v2092_v55  ;;  %v492_v53 = vmul.f32 0.6931472, %v1264_v59  ;;  %v559_v20 = vand.u32 2147483647, %v1999_v0  ;;  %v583_v38 = vmul.f32 -0.5, %v2029_v16  ;;  %1285 = vlog2.f32 %v589_v57 }
  0x86   : > { %v2100_v62 = vsel %vm2033_vm12, %v486_v36, %v483_v21  ;;  %v501_v3 = vmul.f32 0.6931472, %v1266_v61  ;;  %vm2102_vm3 = vcmp.lt.f32.partialorder %v550_v44, 0.0004427343  ;;  %v557_v52 = vadd.f32 1.0, %v556_v37  ;;  %v1274_v49 = vpop.eup %1273 }
  0x87   : > { %v568_v6 = vand.u32 2147483647, %v2004_v43  ;;  %v510_v28 = vmul.f32 0.6931472, %v1268_v29  ;;  %v566_v39 = vadd.f32 1.0, %v565_v24  ;;  %v592_v55 = vmul.f32 -0.5, %v2043_v25 }
  0x88   : > { %v577_v59 = vand.u32 2147483647, %v2019_v8  ;;  %v519_v57 = vmul.f32 0.6931472, %v1270_v40  ;;  %v528_v32 = vmul.f32 0.6931472, %v1272_v11  ;;  %v549_v36 = vmul.f32 %v1993_v42, %v548_v26  ;;  %v1276_v61 = vpop.eup %1275 }
  0x89   : > { %v575_v1 = vadd.f32 1.0, %v574_v34  ;;  %v2112_v21 = vsel %vm2046_vm13, %v495_v12, %v492_v53  ;;  %vm2114_vm4 = vcmp.lt.f32.partialorder %v559_v20, 0.0004427343  ;;  %v584_v37 = vadd.f32 1.0, %v583_v38  ;;  %v1278_v24 = vpop.eup %1277  ;;  %v2675_v38 = vld [vmem:[#allocation35_spill] sm:$0xff] }
  0x8a   : > { %v586_v29 = vand.u32 2147483647, %v2029_v16  ;;  %v2121_v40 = vsel %vm2051_vm14, %v504_v15, %v501_v3  ;;  %v537_v11 = vmul.f32 0.6931472, %v1274_v49  ;;  %v558_v42 = vmul.f32 %v1999_v0, %v557_v52 }
  0x8b   : > { %vm2124_vm5 = vcmp.lt.f32.partialorder %v568_v6, 0.0004427343  ;;  %v1280_v54 = vpop.eup %1279  ;;  %v2130_v12 = vsel %vm2057_vm15, %v513_v17, %v510_v28  ;;  %v567_v34 = vmul.f32 %v2004_v43, %v566_v39  ;;  %v593_v53 = vadd.f32 1.0, %v592_v55 }
  0x8c   : > { %v595_v20 = vand.u32 2147483647, %v2043_v25  ;;  %v2136_v15 = vsel %vm2064_vm0, %v522_v19, %v519_v57  ;;  %v2140_v0 = vsel %vm2069_vm1, %v531_v45, %v528_v32  ;;  %v576_v2 = vmul.f32 %v2019_v8, %v575_v1 }
  0x8d   : > { %vm2143_vm6 = vcmp.lt.f32.partialorder %v577_v59, 0.0004427343  ;;  %v1282_v17 = vpop.eup %1281  ;;  %v546_v4 = vmul.f32 0.6931472, %v1276_v61  ;;  %v585_v43 = vmul.f32 %v2029_v16, %v584_v37  ;;  %vm2148_vm7 = vcmp.lt.f32.partialorder %v586_v29, 0.0004427343 }
  0x8e   : > { %v2641_v19 = vmax.f32 %v1622_v7, 0.0  ;;  %v2159_v8 = vsel %vm2085_vm2, %v540_v46, %v537_v11  ;;  %v555_v32 = vmul.f32 0.6931472, %v1278_v24  ;;  %v564_v45 = vmul.f32 0.6931472, %v1280_v54  ;;  %v2663_v11 = vld [vmem:[#allocation23_spill] sm:$0xff] }
  0x8f   : > { %v2642_v60 = vmax.f32 %v1713_v58, 0.0  ;;  %v594_v16 = vmul.f32 %v2043_v25, %v593_v53  ;;  %vm2167_vm8 = vcmp.lt.f32.partialorder %v595_v20, 0.0004427343  ;;  %v2647_v33 = vmax.f32 %v1759_v9, 0.0  ;;  %v2664_v53 = vld [vmem:[#allocation24_spill] sm:$0xff] }
  0x90   : > { %v2155_v35 = vsub.f32 %v2641_v19, %v1907_v48  ;;  %v2645_v48 = vmax.f32 %v1736_v63, 0.0  ;;  %v1284_v49 = vpop.eup %1283  ;;  %v573_v28 = vmul.f32 0.6931472, %v1282_v17  ;;  %v2651_v39 = vmax.f32 %v1777_v18, 0.0  ;;  %v2665_v17 = vld [vmem:[#allocation25_spill] sm:$0xff]  ;;  %v2666_v19 = vld [vmem:[#allocation26_spill] sm:$0xff] }
  0x91   : > { %v2164_v3 = vsub.f32 %v2642_v60, %v1911_v14  ;;  %v2179_v46 = vsub.f32 %v2647_v33, %v1920_v27  ;;  %v2649_v14 = vmax.f32 %v1762_v10, 0.0  ;;  %v2198_v27 = vsel %vm2102_vm3, %v549_v36, %v546_v4  ;;  %v2660_v36 = vld [vmem:[#allocation59_spill] sm:$0xff] }
  0x92   : > { %v2174_v6 = vsub.f32 %v2645_v48, %v1915_v50  ;;  %v2189_v59 = vsub.f32 %v2651_v39, %v1931_v41  ;;  %v2653_v50 = vmax.f32 %v1784_v22, 0.0  ;;  %v2655_v1 = vmax.f32 %v1787_v23, 0.0  ;;  %v2658_v41 = vld [vmem:[#allocation56_spill] sm:$0xff]  ;;  %v1286_v29 = vpop.eup %1285 }
  0x93   : > { %2648 = vst [vmem:[#allocation61_spill] sm:$0xff] %v2179_v46  ;;  %v2184_v25 = vsub.f32 %v2649_v14, %v1924_v30  ;;  %v2207_v30 = vadd.f32 %v1968_v31, %v2077_v47  ;;  %v2211_v37 = vadd.f32 %v2658_v41, %v2083_v56  ;;  %v2219_v5 = vsel %vm2124_vm5, %v567_v34, %v564_v45  ;;  %v2668_v34 = vld [vmem:[#allocation28_spill] sm:$0xff]  ;;  %v2669_v45 = vld [vmem:[#allocation29_spill] sm:$0xff]  ;;  %v2670_v14 = vld [vmem:[#allocation30_spill] sm:$0xff] }
  0x94   : > { %2646 = vst [vmem:[#allocation60_spill] sm:$0xff] %v2174_v6  ;;  %2652 = vst [vmem:[#allocation63_spill] sm:$0xff] %v2189_v59  ;;  %v2194_v57 = vsub.f32 %v2653_v50, %v1935_v51  ;;  %v2203_v61 = vsub.f32 %v2655_v1, %v1942_v13  ;;  %v2215_v51 = vsel %vm2114_vm4, %v558_v42, %v555_v32  ;;  %v2661_v13 = vld [vmem:[#allocation57_spill] sm:$0xff]  ;;  %v662_v31 = vmul.f32 -2.0, %v2663_v11  ;;  %v2667_v42 = vld [vmem:[#allocation27_spill] sm:$0xff] }
  0x95   : > { %2650 = vst [vmem:[#allocation62_spill] sm:$0xff] %v2184_v25  ;;  %2657 = vst [vmem:[#allocation66_spill] sm:$0xff] %v2207_v30  ;;  %v2223_v24 = vadd.f32 %v2661_v13, %v2660_v36  ;;  %v582_v54 = vmul.f32 0.6931472, %v1284_v49  ;;  %v663_v20 = vmul.f32 -2.0, %v2664_v53  ;;  %v664_v4 = vmul.f32 -2.0, %v2665_v17 }
  0x96   : > { %2654 = vst [vmem:[#allocation64_spill] sm:$0xff] %v2194_v57  ;;  %2656 = vst [vmem:[#allocation65_spill] sm:$0xff] %v2203_v61  ;;  %v665_v60 = vmul.f32 -2.0, %v2666_v19  ;;  %v2231_v44 = vsel %vm2143_vm6, %v576_v2, %v573_v28  ;;  %v666_v26 = vmul.f32 -2.0, %v2667_v42  ;;  %v667_v32 = vmul.f32 -2.0, %v2668_v34  ;;  %v2671_v49 = vld [vmem:[#allocation31_spill] sm:$0xff] }
  0x97   : > { %2659 = vst [vmem:[#allocation56_spill] sm:$0xff] %v2211_v37  ;;  %2662 = vst [vmem:[#allocation59_spill] sm:$0xff] %v2223_v24  ;;  %v668_v48 = vmul.f32 -2.0, %v2669_v45  ;;  %v591_v33 = vmul.f32 0.6931472, %v1286_v29  ;;  %v669_v39 = vmul.f32 -2.0, %v2670_v14  ;;  %v2245_v30 = vsel %vm2148_vm7, %v585_v43, %v582_v54 }
  0x98   : > { %v670_v50 = vmul.f32 -2.0, %v2671_v49  ;;  %v2672_v1 = vld [vmem:[#allocation32_spill] sm:$0xff]  ;;  %v2673_v13 = vld [vmem:[#allocation33_spill] sm:$0xff]  ;;  %v2674_v57 = vld [vmem:[#allocation34_spill] sm:$0xff]  ;;  %v674_v2 = vmul.f32 -2.0, %v2675_v38 }
  0x99   : > { %v671_v41 = vmul.f32 -2.0, %v2672_v1  ;;  %v672_v61 = vmul.f32 -2.0, %v2673_v13  ;;  %v673_v24 = vmul.f32 -2.0, %v2674_v57  ;;  %v2676_v28 = vld [vmem:[#allocation36_spill] sm:$0xff]  ;;  %v2677_v45 = vld [vmem:[#allocation37_spill] sm:$0xff]  ;;  %v2680_v1 = vld [vmem:[#allocation38_spill] sm:$0xff]  ;;  %v2262_v43 = vsel %vm2167_vm8, %v594_v16, %v591_v33 }
  0x9a   : > { %v675_v37 = vmul.f32 -2.0, %v2676_v28  ;;  %v2248_v29 = vmul.f32 -2.0, %v2677_v45  ;;  %v2678_v14 = vld [vmem:[#allocation12_spill] sm:$0xff]  ;;  %v2679_v49 = vld [vmem:[#allocation13_spill] sm:$0xff]  ;;  %v2253_v19 = vmul.f32 -2.0, %v2680_v1  ;;  %v2681_v38 = vld [vmem:[#allocation14_spill] sm:$0xff]  ;;  %v2282_v52 = vmul.f32 %v668_v48, %v1736_v63 }
  0x9b   : > { %v694_v34 = vsub.f32 0.0, %v2678_v14  ;;  %v695_v42 = vsub.f32 0.0, %v2679_v49  ;;  %v2256_v57 = vmul.f32 %v662_v31, %v2678_v14  ;;  %v696_v13 = vsub.f32 0.0, %v2681_v38  ;;  %v2682_v28 = vld [vmem:[#allocation15_spill] sm:$0xff]  ;;  %v2686_v25 = vld [vmem:[#allocation46_spill] sm:$0xff] }
  0x9c   : > { %v697_v17 = vsub.f32 0.0, %v2682_v28  ;;  %v2265_v55 = vmul.f32 %v663_v20, %v2679_v49  ;;  %v2268_v54 = vmul.f32 %v664_v4, %v2681_v38  ;;  %v698_v1 = vsub.f32 0.0, %v1622_v7 }
  0x9d   : > { %v2272_v45 = vmul.f32 %v665_v60, %v2682_v28  ;;  %v2275_v31 = vmul.f32 %v666_v26, %v1622_v7  ;;  %v2278_v14 = vmul.f32 %v667_v32, %v1713_v58  ;;  %v699_v16 = vsub.f32 0.0, %v1713_v58 }
  0x9e   : > { %v700_v20 = vsub.f32 0.0, %v1736_v63  ;;  %v710_v4 = vmax.f32 %v694_v34, 0.0  ;;  %v711_v33 = vmax.f32 %v695_v42, 0.0  ;;  %v2286_v49 = vmul.f32 %v669_v39, %v1759_v9  ;;  %v2683_v39 = vld [vmem:[#allocation40_spill] sm:$0xff] }
  0x9f   : > { %v701_v60 = vsub.f32 0.0, %v1759_v9  ;;  %v712_v38 = vmax.f32 %v696_v13, 0.0  ;;  %v713_v7 = vmax.f32 %v697_v17, 0.0  ;;  %v2290_v26 = vmul.f32 %v670_v50, %v1762_v10 }
  0xa0   : > { %v2293_v32 = vmul.f32 %v671_v41, %v1777_v18  ;;  %v702_v58 = vsub.f32 0.0, %v1762_v10  ;;  %v714_v48 = vmax.f32 %v698_v1, 0.0  ;;  %v2297_v63 = vmul.f32 %v672_v61, %v1784_v22 }
  0xa1   : > { %v2300_v42 = vmul.f32 %v673_v24, %v1787_v23  ;;  %v703_v34 = vsub.f32 0.0, %v1777_v18  ;;  %v715_v9 = vmax.f32 %v699_v16, 0.0  ;;  %v2304_v17 = vmul.f32 %v674_v2, %v2683_v39  ;;  %v2684_v24 = vld [vmem:[#allocation41_spill] sm:$0xff] }
  0xa2   : > { %v716_v50 = vmax.f32 %v700_v20, 0.0  ;;  %v726_v13 = vadd.f32 %v710_v4, %v2077_v47  ;;  %v727_v41 = vadd.f32 %v711_v33, %v2083_v56  ;;  %v704_v10 = vsub.f32 0.0, %v1784_v22  ;;  %v2685_v4 = vld [vmem:[#allocation45_spill] sm:$0xff] }
  0xa3   : > { %v717_v1 = vmax.f32 %v701_v60, 0.0  ;;  %v728_v61 = vadd.f32 %v712_v38, %v2660_v36  ;;  %v729_v28 = vadd.f32 %v713_v7, %v2100_v62  ;;  %v2312_v59 = vmul.f32 %v675_v37, %v2684_v24 }
  0xa4   : > { %v705_v18 = vsub.f32 0.0, %v1787_v23  ;;  %v718_v16 = vmax.f32 %v702_v58, 0.0  ;;  %v730_v2 = vadd.f32 %v714_v48, %v2112_v21  ;;  %v706_v20 = vsub.f32 0.0, %v2683_v39 }
  0xa5   : > { %v707_v47 = vsub.f32 0.0, %v2684_v24  ;;  %v719_v56 = vmax.f32 %v703_v34, 0.0  ;;  %v731_v22 = vadd.f32 %v715_v9, %v2121_v40  ;;  %v708_v33 = vsub.f32 0.0, %v2685_v4 }
  0xa6   : > { %v732_v36 = vadd.f32 %v716_v50, %v2130_v12  ;;  %v742_v60 = vmul.f32 2.0, %v726_v13  ;;  %v743_v38 = vmul.f32 2.0, %v727_v41  ;;  %v720_v37 = vmax.f32 %v704_v10, 0.0 }
  0xa7   : > { %v733_v7 = vadd.f32 %v717_v1, %v2136_v15  ;;  %v744_v23 = vmul.f32 2.0, %v728_v61  ;;  %v745_v58 = vmul.f32 2.0, %v729_v28  ;;  %v709_v48 = vsub.f32 0.0, %v2686_v25 }
  0xa8   : > { %v721_v46 = vmax.f32 %v705_v18, 0.0  ;;  %v734_v39 = vadd.f32 %v718_v16, %v2140_v0  ;;  %v746_v24 = vmul.f32 2.0, %v730_v2  ;;  %v722_v34 = vmax.f32 %v706_v20, 0.0 }
  0xa9   : > { %v723_v53 = vmax.f32 %v707_v47, 0.0  ;;  %v735_v9 = vadd.f32 %v719_v56, %v2159_v8  ;;  %v747_v11 = vmul.f32 2.0, %v731_v22  ;;  %v724_v6 = vmax.f32 %v708_v33, 0.0 }
  0xaa   : > { %v748_v50 = vmul.f32 2.0, %v732_v36  ;;  %v758_v13 = vsub.f32 %v2256_v57, %v742_v60  ;;  %v759_v41 = vsub.f32 %v2265_v55, %v743_v38  ;;  %v736_v10 = vadd.f32 %v720_v37, %v2198_v27 }
  0xab   : > { %v749_v1 = vmul.f32 2.0, %v733_v7  ;;  %v760_v61 = vsub.f32 %v2268_v54, %v744_v23  ;;  %v761_v28 = vsub.f32 %v2272_v45, %v745_v58  ;;  %v725_v18 = vmax.f32 %v709_v48, 0.0 }
  0xac   : > { %v737_v16 = vadd.f32 %v721_v46, %v2215_v51  ;;  %v750_v2 = vmul.f32 2.0, %v734_v39  ;;  %v762_v20 = vsub.f32 %v2275_v31, %v746_v24  ;;  %v738_v47 = vadd.f32 %v722_v34, %v2219_v5 }
  0xad   : > { %v739_v56 = vadd.f32 %v723_v53, %v2231_v44  ;;  %v751_v57 = vmul.f32 2.0, %v735_v9  ;;  %v763_v55 = vsub.f32 %v2278_v14, %v747_v11  ;;  %v740_v22 = vadd.f32 %v724_v6, %v2245_v30 }
  0xae   : > { %v764_v33 = vsub.f32 %v2282_v52, %v748_v50  ;;  %v774_v54 = vmul.f32 1.442695, %v758_v13  ;;  %v776_v36 = vmul.f32 1.442695, %v759_v41  ;;  %v752_v45 = vmul.f32 2.0, %v736_v10 }
  0xaf   : > { %v765_v60 = vsub.f32 %v2286_v49, %v749_v1  ;;  %v778_v46 = vmul.f32 1.442695, %v760_v61  ;;  %v780_v39 = vmul.f32 1.442695, %v761_v28  ;;  %v741_v31 = vadd.f32 %v725_v18, %v2262_v43  ;;  %v2689_v28 = vld [vmem:[#allocation23_spill] sm:$0xff] }
  0xb0   : > { %v766_v24 = vsub.f32 %v2290_v26, %v750_v2  ;;  %1287 = vpow2.f32 %v774_v54  ;;  %v782_v53 = vmul.f32 1.442695, %v762_v20  ;;  %v753_v38 = vmul.f32 2.0, %v737_v16  ;;  %v2693_v2 = vld [vmem:[#allocation63_spill] sm:$0xff] }
  0xb1   : > { %v767_v11 = vsub.f32 %v2293_v32, %v751_v57  ;;  %1289 = vpow2.f32 %v776_v36  ;;  %v784_v6 = vmul.f32 1.442695, %v763_v55  ;;  %v692_v14 = vmul.f32 %v2248_v29, %v2685_v4  ;;  %v2687_v29 = vld [vmem:[#allocation58_spill] sm:$0xff]  ;;  %v2696_v54 = vld [vmem:[#allocation27_spill] sm:$0xff] }
  0xb2   : > { %v754_v52 = vmul.f32 2.0, %v738_v47  ;;  %1291 = vpow2.f32 %v778_v46  ;;  %v786_v37 = vmul.f32 1.442695, %v764_v33  ;;  %v755_v49 = vmul.f32 2.0, %v739_v56  ;;  %v2695_v55 = vld [vmem:[#allocation26_spill] sm:$0xff] }
  0xb3   : > { %v768_v7 = vsub.f32 %v2297_v63, %v752_v45  ;;  %1293 = vpow2.f32 %v780_v39  ;;  %v788_v23 = vmul.f32 1.442695, %v765_v60  ;;  %v693_v26 = vmul.f32 %v2253_v19, %v2686_v25  ;;  %v2697_v45 = vld [vmem:[#allocation28_spill] sm:$0xff]  ;;  %v2698_v39 = vld [vmem:[#allocation29_spill] sm:$0xff] }
  0xb4   : > { %v756_v58 = vmul.f32 2.0, %v740_v22  ;;  %1295 = vpow2.f32 %v782_v53  ;;  %v790_v48 = vmul.f32 1.442695, %v766_v24  ;;  %v757_v32 = vmul.f32 2.0, %v741_v31  ;;  %v2699_v53 = vld [vmem:[#allocation66_spill] sm:$0xff] }
  0xb5   : > { %v769_v34 = vsub.f32 %v2300_v42, %v753_v38  ;;  %1297 = vpow2.f32 %v784_v6  ;;  %v792_v9 = vmul.f32 1.442695, %v767_v11  ;;  %v649_v50 = vadd.f32 %v2687_v29, %v2100_v62  ;;  %v2688_v42 = vld [vmem:[#allocation60_spill] sm:$0xff]  ;;  %v2700_v11 = vld [vmem:[#allocation30_spill] sm:$0xff] }
  0xb6   : > { %v650_v13 = vadd.f32 %v2155_v35, %v2112_v21  ;;  %v651_v63 = vadd.f32 %v2164_v3, %v2121_v40  ;;  %1299 = vpow2.f32 %v786_v37  ;;  %v770_v19 = vsub.f32 %v2304_v17, %v754_v52  ;;  %v2690_v35 = vld [vmem:[#allocation24_spill] sm:$0xff]  ;;  %v2691_v40 = vld [vmem:[#allocation61_spill] sm:$0xff]  ;;  %v2692_v17 = vld [vmem:[#allocation62_spill] sm:$0xff] }
  0xb7   : > { %v771_v41 = vsub.f32 %v2312_v59, %v755_v49  ;;  %1301 = vpow2.f32 %v788_v23  ;;  %v794_v10 = vmul.f32 1.442695, %v768_v7  ;;  %v652_v1 = vadd.f32 %v2688_v42, %v2130_v12  ;;  %v2694_v12 = vld [vmem:[#allocation25_spill] sm:$0xff]  ;;  %v2702_v7 = vld [vmem:[#allocation56_spill] sm:$0xff] }
  0xb8   : > { %v772_v61 = vsub.f32 %v692_v14, %v756_v58  ;;  %1303 = vpow2.f32 %v790_v48  ;;  %v822_v62 = vmul.f32 -0.5, %v2689_v28  ;;  %v773_v18 = vsub.f32 %v693_v26, %v757_v32  ;;  %v2701_v14 = vld [vmem:[#allocation31_spill] sm:$0xff]  ;;  %v2703_v26 = vld [vmem:[#allocation32_spill] sm:$0xff] }
  0xb9   : > { %1305 = vpow2.f32 %v792_v9  ;;  %v796_v21 = vmul.f32 1.442695, %v769_v34  ;;  %v823_v16 = vmul.f32 -0.5, %v2690_v35  ;;  %v653_v3 = vadd.f32 %v2691_v40, %v2136_v15  ;;  %v2704_v34 = vld [vmem:[#allocation59_spill] sm:$0xff] }
  0xba   : > { %v2363_v59 = vadd.f32 %v2692_v17, %v2140_v0  ;;  %v2367_v20 = vadd.f32 %v2693_v2, %v2159_v8  ;;  %v824_v47 = vmul.f32 -0.5, %v2694_v12  ;;  %1307 = vpow2.f32 %v794_v10  ;;  %v2706_v2 = vld [vmem:[#allocation16_spill] sm:$0xff] }
  0xbb   : > { %v798_v56 = vmul.f32 1.442695, %v770_v19  ;;  %v800_v57 = vmul.f32 1.442695, %v771_v41  ;;  %v825_v22 = vmul.f32 -0.5, %v2695_v55  ;;  %v826_v36 = vmul.f32 -0.5, %v2696_v54 }
  0xbc   : > { %v802_v33 = vmul.f32 1.442695, %v772_v61  ;;  %v827_v15 = vmul.f32 -0.5, %v2697_v45  ;;  %v838_v60 = vadd.f32 0.75, %v822_v62  ;;  %1309 = vpow2.f32 %v796_v21  ;;  %v2708_v54 = vld [vmem:[#allocation43_spill] sm:$0xff] }
  0xbd   : > { %v1288_v46 = vpop.eup %1287  ;;  %v804_v0 = vmul.f32 1.442695, %v773_v18  ;;  %v828_v31 = vmul.f32 -0.5, %v2698_v39  ;;  %v839_v8 = vadd.f32 0.75, %v823_v16  ;;  %v829_v6 = vmul.f32 -0.5, %v2700_v11  ;;  %v2705_v16 = vld [vmem:[#allocation39_spill] sm:$0xff] }
  0xbe   : > { %v1290_v24 = vpop.eup %1289  ;;  %v806_v38 = vmul.f32 %v1288_v46, %v2699_v53  ;;  %v830_v52 = vmul.f32 -0.5, %v2701_v14  ;;  %v840_v37 = vadd.f32 0.75, %v824_v47  ;;  %1311 = vpow2.f32 %v798_v56  ;;  %v2707_v56 = vld [vmem:[#allocation42_spill] sm:$0xff]  ;;  %v2710_v46 = vld [vmem:[#allocation44_spill] sm:$0xff] }
  0xbf   : > { %v1292_v49 = vpop.eup %1291  ;;  %v807_v23 = vmul.f32 %v1290_v24, %v2702_v7  ;;  %v831_v58 = vmul.f32 -0.5, %v2703_v26  ;;  %v841_v48 = vadd.f32 0.75, %v825_v22  ;;  %v842_v29 = vadd.f32 0.75, %v826_v36  ;;  %v2716_v14 = vld [vmem:[#allocation18_spill] sm:$0xff] }
  0xc0   : > { %v1294_v32 = vpop.eup %1293  ;;  %v808_v9 = vmul.f32 %v1292_v49, %v2704_v34  ;;  %v843_v19 = vadd.f32 0.75, %v827_v15  ;;  %v870_v41 = vmul.f32 %v838_v60, %v806_v38  ;;  %1313 = vpow2.f32 %v800_v57  ;;  %v2714_v38 = vld [vmem:[#allocation64_spill] sm:$0xff]  ;;  %v2717_v49 = vld [vmem:[#allocation47_spill] sm:$0xff] }
  0xc1   : > { %v1296_v10 = vpop.eup %1295  ;;  %v809_v42 = vmul.f32 %v1294_v32, %v649_v50  ;;  %v844_v61 = vadd.f32 0.75, %v828_v31  ;;  %v871_v28 = vmul.f32 %v839_v8, %v807_v23  ;;  %v845_v21 = vadd.f32 0.75, %v829_v6  ;;  %v2719_v32 = vld [vmem:[#allocation41_spill] sm:$0xff] }
  0xc2   : > { %v1298_v62 = vpop.eup %1297  ;;  %v810_v18 = vmul.f32 %v1296_v10, %v650_v13  ;;  %v872_v35 = vmul.f32 %v840_v37, %v808_v9  ;;  %v886_v40 = vmul.f32 %v2705_v16, %v870_v41  ;;  %vm351_vm9 = vcmp.gt.f32.partialorder %v2706_v2, -0.5  ;;  %v2709_v13 = vld [vmem:[#allocation17_spill] sm:$0xff] }
  0xc3   : > { %v1300_v17 = vpop.eup %1299  ;;  %1315 = vpow2.f32 %v802_v33  ;;  %v811_v12 = vmul.f32 %v1298_v62, %v651_v63  ;;  %v873_v47 = vmul.f32 %v841_v48, %v809_v42  ;;  %v887_v55 = vmul.f32 %v2707_v56, %v871_v28  ;;  %v2711_v33 = vld [vmem:[#allocation52_spill] sm:$0xff]  ;;  %v2718_v48 = vld [vmem:[#allocation53_spill] sm:$0xff] }
  0xc4   : > { %v1302_v22 = vpop.eup %1301  ;;  %1317 = vpow2.f32 %v804_v0  ;;  %v812_v57 = vmul.f32 %v1300_v17, %v652_v1  ;;  %v874_v50 = vmul.f32 %v842_v29, %v810_v18  ;;  %v888_v36 = vmul.f32 %v2708_v54, %v872_v35  ;;  %v2712_v63 = vld [vmem:[#allocation40_spill] sm:$0xff]  ;;  %v2715_v1 = vld [vmem:[#allocation33_spill] sm:$0xff]  ;;  %v2725_v35 = vld [vmem:[#allocation54_spill] sm:$0xff] }
  0xc5   : > { %v1304_v45 = vpop.eup %1303  ;;  %vm352_vm10 = vcmp.gt.f32.partialorder %v2709_v13, -0.5  ;;  %v813_v15 = vmul.f32 %v1302_v22, %v653_v3  ;;  %v875_v60 = vmul.f32 %v843_v19, %v811_v12  ;;  %v889_v39 = vmul.f32 %v2710_v46, %v873_v47  ;;  %v2721_v29 = vld [vmem:[#allocation65_spill] sm:$0xff]  ;;  %v2727_v12 = vld [vmem:[#allocation35_spill] sm:$0xff]  ;;  %v2732_v46 = vld [vmem:[#allocation50_spill] sm:$0xff] }
  0xc6   : > { %v953_v31 = vadd.f32 %v887_v55, %v886_v40  ;;  %v1306_v8 = vpop.eup %1305  ;;  %v2713_v24 = vmax.f32 %v2712_v63, 0.0  ;;  %v656_v0 = vadd.f32 %v2714_v38, %v2198_v27  ;;  %v832_v11 = vmul.f32 -0.5, %v2715_v1  ;;  %v2722_v27 = vld [vmem:[#allocation34_spill] sm:$0xff]  ;;  %v2728_v55 = vld [vmem:[#allocation49_spill] sm:$0xff]  ;;  %v2735_v1 = vld [vmem:[#allocation51_spill] sm:$0xff] }
  0xc7   : > { %v846_v6 = vadd.f32 0.75, %v830_v52  ;;  %vm353_vm11 = vcmp.gt.f32.partialorder %v2716_v14, -0.5  ;;  %v814_v37 = vmul.f32 %v1304_v45, %v2363_v59  ;;  %v876_v3 = vmul.f32 %v844_v61, %v812_v57  ;;  %v1308_v26 = vpop.eup %1307  ;;  %v2723_v52 = vld [vmem:[#allocation19_spill] sm:$0xff]  ;;  %v2724_v61 = vld [vmem:[#allocation48_spill] sm:$0xff]  ;;  %v2739_v14 = vld [vmem:[#allocation22_spill] sm:$0xff] }
  0xc8   : > { %v642_v53 = vsub.f32 %v2713_v24, %v2711_v33  ;;  %v890_v7 = vmul.f32 %v2717_v49, %v874_v50  ;;  %v954_v23 = vadd.f32 %v953_v31, %v888_v36  ;;  %v2720_v34 = vmax.f32 %v2719_v32, 0.0  ;;  %v2731_v45 = vld [vmem:[#allocation36_spill] sm:$0xff] }
  0xc9   : > { %v657_v19 = vadd.f32 %v2721_v29, %v2215_v51  ;;  %v833_v41 = vmul.f32 -0.5, %v2722_v27  ;;  %v847_v10 = vadd.f32 0.75, %v831_v58  ;;  %vm354_vm12 = vcmp.gt.f32.partialorder %v2723_v52, -0.5  ;;  %v1310_v18 = vpop.eup %1309 }
  0xca   : > { %v643_v9 = vsub.f32 %v2720_v34, %v2718_v48  ;;  %v815_v42 = vmul.f32 %v1306_v8, %v2367_v20  ;;  %v877_v59 = vmul.f32 %v845_v21, %v813_v15  ;;  %v891_v28 = vmul.f32 %v2724_v61, %v875_v60  ;;  %v2729_v21 = vld [vmem:[#allocation55_spill] sm:$0xff] }
  0xcb   : > { %v955_v62 = vadd.f32 %v954_v23, %v889_v39  ;;  %v2726_v16 = vmax.f32 %v2685_v4, 0.0  ;;  %v658_v17 = vadd.f32 %v642_v53, %v2219_v5  ;;  %v834_v51 = vmul.f32 -0.5, %v2727_v12  ;;  %v1312_v20 = vpop.eup %1311  ;;  %v2734_v53 = vld [vmem:[#allocation37_spill] sm:$0xff] }
  0xcc   : > { %v848_v47 = vadd.f32 0.75, %v832_v11  ;;  %v816_v56 = vmul.f32 %v1308_v26, %v656_v0  ;;  %v878_v58 = vmul.f32 %v846_v6, %v814_v37  ;;  %v892_v22 = vmul.f32 %v2728_v55, %v876_v3 }
  0xcd   : > { %v644_v40 = vsub.f32 %v2726_v16, %v2725_v35  ;;  %v956_v57 = vadd.f32 %v955_v62, %v890_v7  ;;  %v2730_v50 = vmax.f32 %v2686_v25, 0.0  ;;  %v659_v36 = vadd.f32 %v643_v9, %v2231_v44  ;;  %v1314_v8 = vpop.eup %1313  ;;  %v2736_v7 = vld [vmem:[#allocation38_spill] sm:$0xff]  ;;  %v2737_v9 = vld [vmem:[#allocation20_spill] sm:$0xff] }
  0xce   : > { %v835_v4 = vmul.f32 -0.5, %v2731_v45  ;;  %v849_v15 = vadd.f32 0.75, %v833_v41  ;;  %v817_v60 = vmul.f32 %v1310_v18, %v657_v19  ;;  %v879_v5 = vmul.f32 %v847_v10, %v815_v42 }
  0xcf   : > { %v645_v54 = vsub.f32 %v2730_v50, %v2729_v21  ;;  %v893_v39 = vmul.f32 %v2732_v46, %v877_v59  ;;  %v957_v31 = vadd.f32 %v956_v57, %v891_v28  ;;  %v2733_v33 = vmov 0.0  }
  0xd0   : > { %v1137_v63 = vsel %vm351_vm9, 1.0, %v2733_v33  ;;  %v660_v24 = vadd.f32 %v644_v40, %v2245_v30  ;;  %v836_v25 = vmul.f32 -0.5, %v2734_v53  ;;  %v850_v38 = vadd.f32 0.75, %v834_v51  ;;  %v1316_v37 = vpop.eup %1315 }
  0xd1   : > { %v818_v0 = vmul.f32 %v1312_v20, %v658_v17  ;;  %v880_v44 = vmul.f32 %v848_v47, %v816_v56  ;;  %v894_v11 = vmul.f32 %v2735_v1, %v878_v58  ;;  %v958_v6 = vadd.f32 %v957_v31, %v892_v22  ;;  %v1318_v26 = vpop.eup %1317 }
  0xd2   : > { %v1138_v3 = vsel %vm352_vm10, 1.0, %v2733_v33  ;;  %v661_v49 = vadd.f32 %v645_v54, %v2262_v43  ;;  %v837_v2 = vmul.f32 -0.5, %v2736_v7  ;;  %v851_v23 = vadd.f32 0.75, %v835_v4  ;;  %v2738_v43 = vld [vmem:[#allocation21_spill] sm:$0xff] }
  0xd3   : > { %v819_v30 = vmul.f32 %v1314_v8, %v659_v36  ;;  %v881_v48 = vmul.f32 %v849_v15, %v817_v60  ;;  %v895_v32 = vmul.f32 %v1137_v63, %v879_v5  ;;  %v959_v34 = vadd.f32 %v958_v6, %v893_v39 }
  0xd4   : > { %vm355_vm13 = vcmp.gt.f32.partialorder %v2737_v9, -0.5  ;;  %v1139_v29 = vsel %vm353_vm11, 1.0, %v2733_v33  ;;  %v852_v19 = vadd.f32 0.75, %v836_v25  ;;  %v820_v27 = vmul.f32 %v1316_v37, %v660_v24 }
  0xd5   : > { %v882_v13 = vmul.f32 %v850_v38, %v818_v0  ;;  %v896_v41 = vmul.f32 %v1138_v3, %v880_v44  ;;  %v960_v10 = vadd.f32 %v959_v34, %v894_v11  ;;  %vm356_vm14 = vcmp.gt.f32.partialorder %v2738_v43, -0.5 }
  0xd6   : > { %v1140_v42 = vsel %vm354_vm12, 1.0, %v2733_v33  ;;  %v853_v59 = vadd.f32 0.75, %v837_v2  ;;  %v821_v61 = vmul.f32 %v1318_v26, %v661_v49  ;;  %v883_v28 = vmul.f32 %v851_v23, %v819_v30 }
  0xd7   : > { %v897_v62 = vmul.f32 %v1139_v29, %v881_v48  ;;  %v961_v18 = vadd.f32 %v960_v10, %v895_v32  ;;  %v1141_v35 = vsel %vm355_vm13, 1.0, %v2733_v33  ;;  %vm357_vm15 = vcmp.gt.f32.partialorder %v2739_v14, -0.5 }
  0xd8   : > { %v884_v16 = vmul.f32 %v852_v19, %v820_v27  ;;  %v898_v40 = vmul.f32 %v1140_v42, %v882_v13  ;;  %v1142_v12 = vsel %vm356_vm14, 1.0, %v2733_v33  ;;  %v885_v51 = vmul.f32 %v853_v59, %v821_v61 }
  0xd9   : > { %v962_v17 = vadd.f32 %v961_v18, %v896_v41  ;;  %v899_v47 = vmul.f32 %v1141_v35, %v883_v28  ;;  %v1143_v52 = vsel %vm357_vm15, 1.0, %v2733_v33 }
  0xda   : > { %v900_v58 = vmul.f32 %v1142_v12, %v884_v16  ;;  %v901_v22 = vmul.f32 %v1143_v52, %v885_v51 }
  0xdb   : > { %v963_v56 = vadd.f32 %v962_v17, %v897_v62 }
  0xdd   : > { %v964_v55 = vadd.f32 %v963_v56, %v898_v40 }
  0xdf   : > { %v965_v57 = vadd.f32 %v964_v55, %v899_v47 }
  0xe1   : > { %v966_v20 = vadd.f32 %v965_v57, %v900_v58 }
  0xe3   : > { %v967_v21 = vadd.f32 %v966_v20, %v901_v22 }
  0xe5   : > { %968 = vadd.xlane.f32.xlu0 %v967_v21 }
 0x16e   : > { %v969_v50 = vpop.xlane.xlu0 %968 }
 0x16f   : > { %v970_v54 = vrot.slane %v969_v50, 4 }
 0x171   : > { %v971_v36 = vadd.f32 %v970_v54, %v969_v50 }
 0x173   : > { %v972_v45 = vrot.slane %v971_v36, 2 }
 0x175   : > { %v973_v4 = vadd.f32 %v972_v45, %v971_v36 }
 0x177   : > { %v974_v15 = vrot.slane %v973_v4, 1 }
 0x179   : > { %v975_v60 = vadd.f32 %v974_v15, %v973_v4 }
 0x17b   : > { %1151 = vpush %v975_v60 }
 0x1ac   : > { %s1152_s16 = spop %1151 }
 0x1ad   : > { %v977_v5 = vstv %s1152_s16 }
 0x1ae   : > { %979 = vst [vmem:[%s218_s29] sm:$0xff] %v977_v5 }
 0x1af   : > { %1388 = shalt.err (!%p1385_p7)
}
 0x1b0   : > { %s1389_s19 = scalar_lea.hbm %s2444_s15, 128  ;;  %s1393_s5 = scalar_lea.hbm %s2488_s2, 256 }
 0x1b1   : > { %p1390_p1 = scmp.ne.s32.totalorder %s2444_s15, %s1389_s19  ;;  %p1394_p3 = scmp.lt.s32.totalorder %s2444_s15, %s2488_s2 }
 0x1b2   : > { %p1395_p8 = scmp.lt.s32.totalorder %s1393_s5, %s1389_s19 }
 0x1b3   : > { %p1391_p10 = pnand %p1390_p1, %p1533_p9 }
 0x1b4   : > { %p1396_p0 = por %p1395_p8, %p1394_p3 }
 0x1b5   : > { %p1392_p13 = pneg %p1391_p10 }
 0x1b7   : > { %p1397_p2 = pnand %p1396_p0, %p1392_p13 }
 0x1b9   : > { %1400 = shalt.err (!%p1397_p2)
}
 0x1ba   : > { %1157 = dma.vmem_to_hbm [thread:$0]  (%p1533_p9), %s995_s3, 128, %s2444_s15, %s981_s30  }
 0x1bb PF: > { %s1006_s21 = sand.u32 1, %s1439_s9   ;;  %p1167_p5 = pnand %p1100_p12, %p1540_p11 }
 0x1bc   : > { %s1007_s28 = scalar_lea.sflag [#allocation5], %s1006_s21 }
 0x1bd   : > { %p1168_p6 = pneg %p1167_p5 }
 0x1bf   : > { %1434 = dma.done.wait (%p1168_p6), %s1007_s28, 128  }
 0x1c0   : > { %1436 = vsyncadd (%p1168_p6), %s1007_s28, 4294967168  ;;  %s21_s14 = sadd.s32 1, %s1459_s14   ;;  %s2740_s9 = smov %s1443_s10 }
 0x1c1   : > { %p18_p4 = scmp.ge.s32.totalorder %s21_s14, 4   ;;  %s2741_s10 = smov %s1447_s11 }
 0x1c2   : > { %s2742_s11 = smov %s1538_s23  ;;  %s2743_s12 = smov %s1455_s13 }
 0x1c3   : > { %s2744_s13 = smov %s2746_s17  ;;  %20 = sbr.rel (!%p18_p4) target bundleno = 8 (0x8), region = 94 }
 0x1c8   :  { %1012 = vsyncpa [#allocation4], 1 }
 0x1c9   :  { %1014 = vsyncpa [#allocation4 + $0x1], 1 }
 0x1ca   :  { %1015 = vsyncpa [#allocation7], 1 }
 0x1cb   :  { %1017 = vsyncpa [#allocation7 + $0x1], 1 }
 0x1cc   :  { %1018 = vsyncpa [#allocation5], 1 }
 0x1cd   :  { %1020 = vsyncpa [#allocation5 + $0x1], 1 }

</bundles_post_ra>
